<compile_context>
chip_gen: v7x
topology: tpu7x:2x2x1
jax: 0.10.0
libtpu: 0.0.40
codegen_flags: <defaults>
</compile_context>

<pallas_src>
import functools

import jax
import jax.numpy as jnp
from jax import lax
from jax.experimental import pallas as pl
from jax.experimental.pallas import tpu as pltpu

STAGE_ONE = 7500
STAGE_TWO = 9000

_MAX_ROW_TILE = 512          # 512 rows * 128 lanes = 65536 pixels per grid step
                             # -> (6+3)*512*128*4B ~= 1.2 MB/step, ~2.4 MB dbl-buffered


def _choose_row_tile(num_rows):
    """Largest row tile <= _MAX_ROW_TILE dividing num_rows (multiple of 8 or full)."""
    if num_rows <= _MAX_ROW_TILE:
        return num_rows
    for rt in range(_MAX_ROW_TILE, 0, -8):          # 512, 504, ..., 8 (all %8 == 0)
        if num_rows % rt == 0:
            return rt
    return num_rows     # no aligned divisor: fall back to one block per image


def _choose_chunk(row_tile):
    """Inner-loop sublane chunk: small divisor of row_tile (prefer 16 or 8)."""
    for c in (16, 8):
        if row_tile % c == 0:
            return c
    for c in range(min(row_tile, 16), 0, -1):
        if row_tile % c == 0:
            return c
    return row_tile


# ----------------------------- Pallas kernel ------------------------------ #
def _join_kernel(x_ref, e_ref,                      # (6, RT, 128), (3, RT, 128) VMEM
                 sqrt_a_ref, sqrt_1ma_ref, t_ref,   # (B,) f32 SMEM
                 wd_ref, bd_ref, wt_ref,            # (3,6), (3,), (3,) f32 SMEM
                 wc_ref, bc_ref,                    # (3,6), (3,)       f32 SMEM
                 out_ref,                           # (8, 128) f32 VMEM (per batch)
                 acc_ref,                           # (3, CHUNK, 128) f32 VMEM scratch
                 *, chunk, compute_color):
    bi = pl.program_id(0)
    li = pl.program_id(1)
    n_li = pl.num_programs(1)
    n_chunks = x_ref.shape[1] // chunk

    # per-batch schedule scalars (SMEM)
    sa = sqrt_a_ref[bi]                 # sqrt(alpha_bar_t)
    s1 = sqrt_1ma_ref[bi]               # sqrt(1 - alpha_bar_t)
    tf = t_ref[bi]                      # t.float()
    inv_sa = 1.0 / sa                   # hoisted: one scalar reciprocal per step

    # hoist all tiny weights out of the pixel loop (SMEM scalar reads)
    wd = [[wd_ref[c, j] for j in range(6)] for c in range(3)]
    bdt = [bd_ref[c] + tf * wt_ref[c] for c in range(3)]
    if compute_color:
        wc = [[wc_ref[c, j] for j in range(6)] for c in range(3)]
        bc = [bc_ref[c] for c in range(3)]

    @pl.when(li == 0)
    def _():
        acc_ref[...] = jnp.zeros(acc_ref.shape, acc_ref.dtype)

    def chunk_body(i, carry):
        n_acc, p1_acc, p2_acc = carry
        r0 = pl.multiple_of(i * chunk, chunk)
        rows = pl.ds(r0, chunk)
        x_low = [x_ref[c, rows, :] for c in range(3)]        # low-light channels
        x_gt = [x_ref[3 + c, rows, :] for c in range(3)]     # ground-truth channels
        eps = [e_ref[c, rows, :] for c in range(3)]          # noise e

        # forward diffusion: x = x0_gt * sqrt(a) + e * sqrt(1 - a)
        x_noisy = [x_gt[c] * sa + eps[c] * s1 for c in range(3)]

        # stand-in NAFNet: 1x1 conv over cat([x_low, x_noisy]) + time-emb bias
        x0_pred = []
        for c in range(3):
            out_c = (wd[c][0] * x_low[0] + wd[c][1] * x_low[1]
                     + wd[c][2] * x_low[2]
                     + wd[c][3] * x_noisy[0] + wd[c][4] * x_noisy[1]
                     + wd[c][5] * x_noisy[2] + bdt[c])
            # x0_pred = (x - output * sqrt(1-a)) / sqrt(a)
            x0_c = (x_noisy[c] - out_c * s1) * inv_sa
            x0_pred.append(x0_c)
            dn = eps[c] - out_c
            n_acc = n_acc + dn * dn
            dp = x0_c - x_gt[c]
            p1_acc = p1_acc + dp * dp

        if compute_color:
            # stand-in ColorRestoration: 1x1 conv over cat([x0_pred, x_low])
            for c in range(3):
                xc_c = (wc[c][0] * x0_pred[0] + wc[c][1] * x0_pred[1]
                        + wc[c][2] * x0_pred[2]
                        + wc[c][3] * x_low[0] + wc[c][4] * x_low[1]
                        + wc[c][5] * x_low[2] + bc[c])
                p2_acc = p2_acc + jnp.abs(xc_c - x_gt[c])
        return n_acc, p1_acc, p2_acc

    carry0 = (acc_ref[0], acc_ref[1], acc_ref[2])
    n_acc, p1_acc, p2_acc = lax.fori_loop(0, n_chunks, chunk_body, carry0)
    acc_ref[0] = n_acc
    acc_ref[1] = p1_acc
    acc_ref[2] = p2_acc

    @pl.when(li == n_li - 1)
    def _():
        out_ref[...] = jnp.zeros(out_ref.shape, out_ref.dtype)
        out_ref[0:1, :] = jnp.full((1, 128), jnp.sum(n_acc), jnp.float32)
        out_ref[1:2, :] = jnp.full((1, 128), jnp.sum(p1_acc), jnp.float32)
        out_ref[2:3, :] = jnp.full((1, 128), jnp.sum(p2_acc), jnp.float32)


def _losses_pallas(x4, e4, sqrt_a, sqrt_1ma, t_f, p, compute_color):
    """x4: (B, 6, R, 128), e4: (B, 3, R, 128) -> (B, 8, 128) loss rows."""
    B, _, R, _ = x4.shape
    rt = _choose_row_tile(R)
    chunk = _choose_chunk(rt)
    n_l = R // rt

    smem = pl.BlockSpec(memory_space=pltpu.MemorySpace.SMEM)
    x_spec = pl.BlockSpec((None, 6, rt, 128), lambda b, l: (b, 0, l, 0))
    e_spec = pl.BlockSpec((None, 3, rt, 128), lambda b, l: (b, 0, l, 0))
    out_spec = pl.BlockSpec((None, 8, 128), lambda b, l: (b, 0, 0))

    grid_spec = pltpu.PrefetchScalarGridSpec(
        num_scalar_prefetch=0,
        grid=(B, n_l),
        in_specs=[x_spec, e_spec,
                  smem, smem, smem,          # sqrt_a, sqrt_1ma, t
                  smem, smem, smem,          # wd, bd, wt
                  smem, smem],               # wc, bc
        out_specs=out_spec,
        scratch_shapes=[pltpu.VMEM((3, chunk, 128), jnp.float32)],
    )

    block_bytes = (6 + 3) * rt * 128 * 4
    vmem_limit = max(32 * 1024 * 1024, 2 * block_bytes + 2 * 1024 * 1024)

    kernel = functools.partial(_join_kernel, chunk=chunk,
                               compute_color=compute_color)
    return pl.pallas_call(
        kernel,
        grid_spec=grid_spec,
        out_shape=jax.ShapeDtypeStruct((B, 8, 128), jnp.float32),
        compiler_params=pltpu.CompilerParams(
            dimension_semantics=("parallel", "arbitrary"),
            vmem_limit_bytes=vmem_limit),
    )(x4, e4, sqrt_a, sqrt_1ma, t_f,
      p["wd"], p["bd"], p["wt"], p["wc"], p["bc"])


# ------------------------------ glue / params ----------------------------- #
def init_params(key):
    # TODO(synk): NAFNet(config) / ColorRestoration definitions are not in the
    # provided snippet; deterministic stand-ins = 1x1 conv (6->3 channels) plus
    # a per-channel time-embedding bias for the diffusion net.
    ks = jax.random.split(key, 5)
    return {
        "wd": 0.1 * jax.random.normal(ks[0], (3, 6), jnp.float32),
        "bd": 0.01 * jax.random.normal(ks[1], (3,), jnp.float32),
        "wt": 0.01 * jax.random.normal(ks[2], (3,), jnp.float32),
        "wc": 0.1 * jax.random.normal(ks[3], (3, 6), jnp.float32),
        "bc": 0.01 * jax.random.normal(ks[4], (3,), jnp.float32),
    }


def join_net_forward(params, x, reference, t, e, b, epoch):
    """JoinNet.forward(x, reference, t, e, b, epoch) -> (l_noise, l_pixel1, l_pixel2, l_color).

    x: (B, 6, H, W) NCHW  (channels 0-2: low-light input, 3-5: ground truth)
    reference: unused (as in the PyTorch noise_estimation_loss)
    t: (B,) int timesteps, e: (B, 3, H, W) noise, b: (T,) betas, epoch: python int
    """
    del reference
    B, _, H, W = x.shape
    L = H * W
    if L % 128 != 0:
        # TODO(synk): ragged pixel counts would need a masked tail tile.
        raise ValueError("H*W must be a multiple of 128")
    R = L // 128

    # a = (1 - b).cumprod(0).index_select(0, t)   (tiny schedule glue)
    a = jnp.cumprod(1.0 - b)[t]
    sqrt_a = jnp.sqrt(a).astype(jnp.float32)
    sqrt_1ma = jnp.sqrt(1.0 - a).astype(jnp.float32)
    t_f = t.astype(jnp.float32)

    # free reshapes (contiguous trailing dims) — no channel padding, no HBM copy
    x4 = x.reshape(B, 6, R, 128).astype(jnp.float32)
    e4 = e.reshape(B, 3, R, 128).astype(jnp.float32)

    compute_color = bool(epoch > STAGE_ONE)   # static kernel specialization
    losses = _losses_pallas(x4, e4, sqrt_a, sqrt_1ma, t_f, params, compute_color)

    # .sum(dim=(1,2,3)).mean(dim=0)
    l_noise = jnp.mean(losses[:, 0, 0])
    l_pixel1 = jnp.mean(losses[:, 1, 0])
    l_pixel2 = jnp.mean(losses[:, 2, 0]) if compute_color else -1
    l_color = -1                      # never reassigned in JoinNet.forward
    # TODO(synk): rgb_histogram / Loss_color inside color_restoration are
    # undefined in the snippet and their result (color_loss) is discarded by
    # JoinNet.forward, so only the L1 pixel loss is computed.
    return l_noise, l_pixel1, l_pixel2, l_color


# ---------------------------------- main ----------------------------------- #
if __name__ == "__main__":
    key = jax.random.PRNGKey(0)
    k1, k2, k3, k4 = jax.random.split(key, 4)

    B, H, W, T = 2, 16, 16, 10
    x = jax.random.normal(k1, (B, 6, H, W), jnp.float32)          # [low-light | GT]
    e = jax.random.normal(k2, (B, 3, H, W), jnp.float32)          # noise
    t = jax.random.randint(k3, (B,), 0, T)                        # timesteps
    betas = jnp.linspace(1e-4, 2e-2, T, dtype=jnp.float32)
    reference = jax.random.normal(k4, (B, 3, H, W), jnp.float32)  # unused

    params = init_params(jax.random.PRNGKey(42))
    epoch = 8000   # stage-two branch: diffusion + color pixel loss

    l_noise, l_pixel1, l_pixel2, l_color = join_net_forward(
        params, x, reference, t, e, betas, epoch)
    jax.block_until_ready((l_noise, l_pixel1, l_pixel2))
    print("KERNEL_OK")
</pallas_src>

<mosaic_0001>
module attributes {stable_mosaic.version = 11 : i64} {
  func.func @_join_kernel(%arg0: i32, %arg1: i32, %arg2: memref<1x6x2x128xf32, #tpu.memory_space<vmem>>, %arg3: memref<1x3x2x128xf32, #tpu.memory_space<vmem>>, %arg4: memref<2xf32, #tpu.memory_space<smem>>, %arg5: memref<2xf32, #tpu.memory_space<smem>>, %arg6: memref<2xf32, #tpu.memory_space<smem>>, %arg7: memref<3x6xf32, #tpu.memory_space<smem>>, %arg8: memref<3xf32, #tpu.memory_space<smem>>, %arg9: memref<3xf32, #tpu.memory_space<smem>>, %arg10: memref<3x6xf32, #tpu.memory_space<smem>>, %arg11: memref<3xf32, #tpu.memory_space<smem>>, %arg12: memref<1x8x128xf32, #tpu.memory_space<vmem>>, %arg13: memref<3x2x128xf32, #tpu.memory_space<vmem>>) attributes {dimension_semantics = [#tpu.dimension_semantics<parallel>, #tpu.dimension_semantics<arbitrary>], iteration_bounds = array<i64: 2, 1>, scalar_prefetch = 0 : i64, scratch_operands = 1 : i64, tpu.core_type = #tpu.core_type<tc>, window_params = [{transform_indices = @transform_0, window_bounds = array<i64: 1, 6, 2, 128>}, {transform_indices = @transform_1, window_bounds = array<i64: 1, 3, 2, 128>}, {transform_indices = @transform_2, window_bounds = array<i64: 2>}, {transform_indices = @transform_3, window_bounds = array<i64: 2>}, {transform_indices = @transform_4, window_bounds = array<i64: 2>}, {transform_indices = @transform_5, window_bounds = array<i64: 3, 6>}, {transform_indices = @transform_6, window_bounds = array<i64: 3>}, {transform_indices = @transform_7, window_bounds = array<i64: 3>}, {transform_indices = @transform_8, window_bounds = array<i64: 3, 6>}, {transform_indices = @transform_9, window_bounds = array<i64: 3>}, {transform_indices = @transform_10, window_bounds = array<i64: 1, 8, 128>}]} {
    %0 = arith.index_cast %arg0 : i32 to index
    %1 = memref.load %arg4[%0] : memref<2xf32, #tpu.memory_space<smem>>
    %2 = arith.index_cast %arg0 : i32 to index
    %3 = memref.load %arg5[%2] : memref<2xf32, #tpu.memory_space<smem>>
    %4 = arith.index_cast %arg0 : i32 to index
    %5 = memref.load %arg6[%4] : memref<2xf32, #tpu.memory_space<smem>>
    %cst = arith.constant 1.000000e+00 : f32
    %6 = arith.divf %cst, %1 : f32
    %c0 = arith.constant 0 : index
    %c0_0 = arith.constant 0 : index
    %7 = memref.load %arg7[%c0, %c0_0] : memref<3x6xf32, #tpu.memory_space<smem>>
    %c0_1 = arith.constant 0 : index
    %c1 = arith.constant 1 : index
    %8 = memref.load %arg7[%c0_1, %c1] : memref<3x6xf32, #tpu.memory_space<smem>>
    %c0_2 = arith.constant 0 : index
    %c2 = arith.constant 2 : index
    %9 = memref.load %arg7[%c0_2, %c2] : memref<3x6xf32, #tpu.memory_space<smem>>
    %c0_3 = arith.constant 0 : index
    %c3 = arith.constant 3 : index
    %10 = memref.load %arg7[%c0_3, %c3] : memref<3x6xf32, #tpu.memory_space<smem>>
    %c0_4 = arith.constant 0 : index
    %c4 = arith.constant 4 : index
    %11 = memref.load %arg7[%c0_4, %c4] : memref<3x6xf32, #tpu.memory_space<smem>>
    %c0_5 = arith.constant 0 : index
    %c5 = arith.constant 5 : index
    %12 = memref.load %arg7[%c0_5, %c5] : memref<3x6xf32, #tpu.memory_space<smem>>
    %c1_6 = arith.constant 1 : index
    %c0_7 = arith.constant 0 : index
    %13 = memref.load %arg7[%c1_6, %c0_7] : memref<3x6xf32, #tpu.memory_space<smem>>
    %c1_8 = arith.constant 1 : index
    %c1_9 = arith.constant 1 : index
    %14 = memref.load %arg7[%c1_8, %c1_9] : memref<3x6xf32, #tpu.memory_space<smem>>
    %c1_10 = arith.constant 1 : index
    %c2_11 = arith.constant 2 : index
    %15 = memref.load %arg7[%c1_10, %c2_11] : memref<3x6xf32, #tpu.memory_space<smem>>
    %c1_12 = arith.constant 1 : index
    %c3_13 = arith.constant 3 : index
    %16 = memref.load %arg7[%c1_12, %c3_13] : memref<3x6xf32, #tpu.memory_space<smem>>
    %c1_14 = arith.constant 1 : index
    %c4_15 = arith.constant 4 : index
    %17 = memref.load %arg7[%c1_14, %c4_15] : memref<3x6xf32, #tpu.memory_space<smem>>
    %c1_16 = arith.constant 1 : index
    %c5_17 = arith.constant 5 : index
    %18 = memref.load %arg7[%c1_16, %c5_17] : memref<3x6xf32, #tpu.memory_space<smem>>
    %c2_18 = arith.constant 2 : index
    %c0_19 = arith.constant 0 : index
    %19 = memref.load %arg7[%c2_18, %c0_19] : memref<3x6xf32, #tpu.memory_space<smem>>
    %c2_20 = arith.constant 2 : index
    %c1_21 = arith.constant 1 : index
    %20 = memref.load %arg7[%c2_20, %c1_21] : memref<3x6xf32, #tpu.memory_space<smem>>
    %c2_22 = arith.constant 2 : index
    %c2_23 = arith.constant 2 : index
    %21 = memref.load %arg7[%c2_22, %c2_23] : memref<3x6xf32, #tpu.memory_space<smem>>
    %c2_24 = arith.constant 2 : index
    %c3_25 = arith.constant 3 : index
    %22 = memref.load %arg7[%c2_24, %c3_25] : memref<3x6xf32, #tpu.memory_space<smem>>
    %c2_26 = arith.constant 2 : index
    %c4_27 = arith.constant 4 : index
    %23 = memref.load %arg7[%c2_26, %c4_27] : memref<3x6xf32, #tpu.memory_space<smem>>
    %c2_28 = arith.constant 2 : index
    %c5_29 = arith.constant 5 : index
    %24 = memref.load %arg7[%c2_28, %c5_29] : memref<3x6xf32, #tpu.memory_space<smem>>
    %c0_30 = arith.constant 0 : index
    %25 = memref.load %arg8[%c0_30] : memref<3xf32, #tpu.memory_space<smem>>
    %c0_31 = arith.constant 0 : index
    %26 = memref.load %arg9[%c0_31] : memref<3xf32, #tpu.memory_space<smem>>
    %27 = arith.mulf %5, %26 : f32
    %28 = arith.addf %25, %27 : f32
    %c1_32 = arith.constant 1 : index
    %29 = memref.load %arg8[%c1_32] : memref<3xf32, #tpu.memory_space<smem>>
    %c1_33 = arith.constant 1 : index
    %30 = memref.load %arg9[%c1_33] : memref<3xf32, #tpu.memory_space<smem>>
    %31 = arith.mulf %5, %30 : f32
    %32 = arith.addf %29, %31 : f32
    %c2_34 = arith.constant 2 : index
    %33 = memref.load %arg8[%c2_34] : memref<3xf32, #tpu.memory_space<smem>>
    %c2_35 = arith.constant 2 : index
    %34 = memref.load %arg9[%c2_35] : memref<3xf32, #tpu.memory_space<smem>>
    %35 = arith.mulf %5, %34 : f32
    %36 = arith.addf %33, %35 : f32
    %c0_36 = arith.constant 0 : index
    %c0_37 = arith.constant 0 : index
    %37 = memref.load %arg10[%c0_36, %c0_37] : memref<3x6xf32, #tpu.memory_space<smem>>
    %c0_38 = arith.constant 0 : index
    %c1_39 = arith.constant 1 : index
    %38 = memref.load %arg10[%c0_38, %c1_39] : memref<3x6xf32, #tpu.memory_space<smem>>
    %c0_40 = arith.constant 0 : index
    %c2_41 = arith.constant 2 : index
    %39 = memref.load %arg10[%c0_40, %c2_41] : memref<3x6xf32, #tpu.memory_space<smem>>
    %c0_42 = arith.constant 0 : index
    %c3_43 = arith.constant 3 : index
    %40 = memref.load %arg10[%c0_42, %c3_43] : memref<3x6xf32, #tpu.memory_space<smem>>
    %c0_44 = arith.constant 0 : index
    %c4_45 = arith.constant 4 : index
    %41 = memref.load %arg10[%c0_44, %c4_45] : memref<3x6xf32, #tpu.memory_space<smem>>
    %c0_46 = arith.constant 0 : index
    %c5_47 = arith.constant 5 : index
    %42 = memref.load %arg10[%c0_46, %c5_47] : memref<3x6xf32, #tpu.memory_space<smem>>
    %c1_48 = arith.constant 1 : index
    %c0_49 = arith.constant 0 : index
    %43 = memref.load %arg10[%c1_48, %c0_49] : memref<3x6xf32, #tpu.memory_space<smem>>
    %c1_50 = arith.constant 1 : index
    %c1_51 = arith.constant 1 : index
    %44 = memref.load %arg10[%c1_50, %c1_51] : memref<3x6xf32, #tpu.memory_space<smem>>
    %c1_52 = arith.constant 1 : index
    %c2_53 = arith.constant 2 : index
    %45 = memref.load %arg10[%c1_52, %c2_53] : memref<3x6xf32, #tpu.memory_space<smem>>
    %c1_54 = arith.constant 1 : index
    %c3_55 = arith.constant 3 : index
    %46 = memref.load %arg10[%c1_54, %c3_55] : memref<3x6xf32, #tpu.memory_space<smem>>
    %c1_56 = arith.constant 1 : index
    %c4_57 = arith.constant 4 : index
    %47 = memref.load %arg10[%c1_56, %c4_57] : memref<3x6xf32, #tpu.memory_space<smem>>
    %c1_58 = arith.constant 1 : index
    %c5_59 = arith.constant 5 : index
    %48 = memref.load %arg10[%c1_58, %c5_59] : memref<3x6xf32, #tpu.memory_space<smem>>
    %c2_60 = arith.constant 2 : index
    %c0_61 = arith.constant 0 : index
    %49 = memref.load %arg10[%c2_60, %c0_61] : memref<3x6xf32, #tpu.memory_space<smem>>
    %c2_62 = arith.constant 2 : index
    %c1_63 = arith.constant 1 : index
    %50 = memref.load %arg10[%c2_62, %c1_63] : memref<3x6xf32, #tpu.memory_space<smem>>
    %c2_64 = arith.constant 2 : index
    %c2_65 = arith.constant 2 : index
    %51 = memref.load %arg10[%c2_64, %c2_65] : memref<3x6xf32, #tpu.memory_space<smem>>
    %c2_66 = arith.constant 2 : index
    %c3_67 = arith.constant 3 : index
    %52 = memref.load %arg10[%c2_66, %c3_67] : memref<3x6xf32, #tpu.memory_space<smem>>
    %c2_68 = arith.constant 2 : index
    %c4_69 = arith.constant 4 : index
    %53 = memref.load %arg10[%c2_68, %c4_69] : memref<3x6xf32, #tpu.memory_space<smem>>
    %c2_70 = arith.constant 2 : index
    %c5_71 = arith.constant 5 : index
    %54 = memref.load %arg10[%c2_70, %c5_71] : memref<3x6xf32, #tpu.memory_space<smem>>
    %c0_72 = arith.constant 0 : index
    %55 = memref.load %arg11[%c0_72] : memref<3xf32, #tpu.memory_space<smem>>
    %c1_73 = arith.constant 1 : index
    %56 = memref.load %arg11[%c1_73] : memref<3xf32, #tpu.memory_space<smem>>
    %c2_74 = arith.constant 2 : index
    %57 = memref.load %arg11[%c2_74] : memref<3xf32, #tpu.memory_space<smem>>
    %c0_i32 = arith.constant 0 : i32
    %58 = arith.cmpi eq, %arg1, %c0_i32 : i32
    %59 = arith.extui %58 : i1 to i32
    %c0_i32_75 = arith.constant 0 : i32
    %60 = arith.cmpi ne, %59, %c0_i32_75 : i32
    scf.if %60 {
      %cst_124 = arith.constant 0.000000e+00 : f32
      %279 = vector.broadcast %cst_124 : f32 to vector<3x2x128xf32>
      %c0_125 = arith.constant 0 : index
      %c0_126 = arith.constant 0 : index
      %c0_127 = arith.constant 0 : index
      %280 = vector.load %arg13[%c0_125, %c0_126, %c0_127] : memref<3x2x128xf32, #tpu.memory_space<vmem>>, vector<3x2x128xf32>
      tpu.vector_store %arg13[%c0_125, %c0_126, %c0_127], %279 {strides = array<i32>} : memref<3x2x128xf32, #tpu.memory_space<vmem>>, vector<3x2x128xf32>,
    } else {
    }
    %c0_76 = arith.constant 0 : index
    %c0_77 = arith.constant 0 : index
    %c0_78 = arith.constant 0 : index
    %61 = vector.load %arg13[%c0_76, %c0_77, %c0_78] : memref<3x2x128xf32, #tpu.memory_space<vmem>>, vector<1x2x128xf32>
    %62 = vector.shape_cast %61 : vector<1x2x128xf32> to vector<2x128xf32>
    %c1_79 = arith.constant 1 : index
    %c0_80 = arith.constant 0 : index
    %c0_81 = arith.constant 0 : index
    %63 = vector.load %arg13[%c1_79, %c0_80, %c0_81] : memref<3x2x128xf32, #tpu.memory_space<vmem>>, vector<1x2x128xf32>
    %64 = vector.shape_cast %63 : vector<1x2x128xf32> to vector<2x128xf32>
    %c2_82 = arith.constant 2 : index
    %c0_83 = arith.constant 0 : index
    %c0_84 = arith.constant 0 : index
    %65 = vector.load %arg13[%c2_82, %c0_83, %c0_84] : memref<3x2x128xf32, #tpu.memory_space<vmem>>, vector<1x2x128xf32>
    %66 = vector.shape_cast %65 : vector<1x2x128xf32> to vector<2x128xf32>
    %c0_i32_85 = arith.constant 0 : i32
    %c2_i32 = arith.constant 2 : i32
    %67 = arith.muli %c0_i32_85, %c2_i32 : i32
    %68 = tpu.assume_multiple %67, 2 : i32
    %c0_86 = arith.constant 0 : index
    %c0_87 = arith.constant 0 : index
    %69 = arith.index_cast %68 : i32 to index
    %c0_88 = arith.constant 0 : index
    %70 = vector.load %arg2[%c0_86, %c0_87, %69, %c0_88] : memref<1x6x2x128xf32, #tpu.memory_space<vmem>>, vector<1x1x2x128xf32>
    %71 = vector.shape_cast %70 : vector<1x1x2x128xf32> to vector<2x128xf32>
    %c0_89 = arith.constant 0 : index
    %c1_90 = arith.constant 1 : index
    %72 = arith.index_cast %68 : i32 to index
    %c0_91 = arith.constant 0 : index
    %73 = vector.load %arg2[%c0_89, %c1_90, %72, %c0_91] : memref<1x6x2x128xf32, #tpu.memory_space<vmem>>, vector<1x1x2x128xf32>
    %74 = vector.shape_cast %73 : vector<1x1x2x128xf32> to vector<2x128xf32>
    %c0_92 = arith.constant 0 : index
    %c2_93 = arith.constant 2 : index
    %75 = arith.index_cast %68 : i32 to index
    %c0_94 = arith.constant 0 : index
    %76 = vector.load %arg2[%c0_92, %c2_93, %75, %c0_94] : memref<1x6x2x128xf32, #tpu.memory_space<vmem>>, vector<1x1x2x128xf32>
    %77 = vector.shape_cast %76 : vector<1x1x2x128xf32> to vector<2x128xf32>
    %c0_95 = arith.constant 0 : index
    %c3_96 = arith.constant 3 : index
    %78 = arith.index_cast %68 : i32 to index
    %c0_97 = arith.constant 0 : index
    %79 = vector.load %arg2[%c0_95, %c3_96, %78, %c0_97] : memref<1x6x2x128xf32, #tpu.memory_space<vmem>>, vector<1x1x2x128xf32>
    %80 = vector.shape_cast %79 : vector<1x1x2x128xf32> to vector<2x128xf32>
    %c0_98 = arith.constant 0 : index
    %c4_99 = arith.constant 4 : index
    %81 = arith.index_cast %68 : i32 to index
    %c0_100 = arith.constant 0 : index
    %82 = vector.load %arg2[%c0_98, %c4_99, %81, %c0_100] : memref<1x6x2x128xf32, #tpu.memory_space<vmem>>, vector<1x1x2x128xf32>
    %83 = vector.shape_cast %82 : vector<1x1x2x128xf32> to vector<2x128xf32>
    %c0_101 = arith.constant 0 : index
    %c5_102 = arith.constant 5 : index
    %84 = arith.index_cast %68 : i32 to index
    %c0_103 = arith.constant 0 : index
    %85 = vector.load %arg2[%c0_101, %c5_102, %84, %c0_103] : memref<1x6x2x128xf32, #tpu.memory_space<vmem>>, vector<1x1x2x128xf32>
    %86 = vector.shape_cast %85 : vector<1x1x2x128xf32> to vector<2x128xf32>
    %c0_104 = arith.constant 0 : index
    %c0_105 = arith.constant 0 : index
    %87 = arith.index_cast %68 : i32 to index
    %c0_106 = arith.constant 0 : index
    %88 = vector.load %arg3[%c0_104, %c0_105, %87, %c0_106] : memref<1x3x2x128xf32, #tpu.memory_space<vmem>>, vector<1x1x2x128xf32>
    %89 = vector.shape_cast %88 : vector<1x1x2x128xf32> to vector<2x128xf32>
    %c0_107 = arith.constant 0 : index
    %c1_108 = arith.constant 1 : index
    %90 = arith.index_cast %68 : i32 to index
    %c0_109 = arith.constant 0 : index
    %91 = vector.load %arg3[%c0_107, %c1_108, %90, %c0_109] : memref<1x3x2x128xf32, #tpu.memory_space<vmem>>, vector<1x1x2x128xf32>
    %92 = vector.shape_cast %91 : vector<1x1x2x128xf32> to vector<2x128xf32>
    %c0_110 = arith.constant 0 : index
    %c2_111 = arith.constant 2 : index
    %93 = arith.index_cast %68 : i32 to index
    %c0_112 = arith.constant 0 : index
    %94 = vector.load %arg3[%c0_110, %c2_111, %93, %c0_112] : memref<1x3x2x128xf32, #tpu.memory_space<vmem>>, vector<1x1x2x128xf32>
    %95 = vector.shape_cast %94 : vector<1x1x2x128xf32> to vector<2x128xf32>
    %96 = vector.broadcast %1 : f32 to vector<2x128xf32>
    %97 = arith.mulf %80, %96 : vector<2x128xf32>
    %98 = vector.broadcast %3 : f32 to vector<2x128xf32>
    %99 = arith.mulf %89, %98 : vector<2x128xf32>
    %100 = arith.addf %97, %99 : vector<2x128xf32>
    %101 = vector.broadcast %1 : f32 to vector<2x128xf32>
    %102 = arith.mulf %83, %101 : vector<2x128xf32>
    %103 = vector.broadcast %3 : f32 to vector<2x128xf32>
    %104 = arith.mulf %92, %103 : vector<2x128xf32>
    %105 = arith.addf %102, %104 : vector<2x128xf32>
    %106 = vector.broadcast %1 : f32 to vector<2x128xf32>
    %107 = arith.mulf %86, %106 : vector<2x128xf32>
    %108 = vector.broadcast %3 : f32 to vector<2x128xf32>
    %109 = arith.mulf %95, %108 : vector<2x128xf32>
    %110 = arith.addf %107, %109 : vector<2x128xf32>
    %111 = vector.broadcast %7 : f32 to vector<2x128xf32>
    %112 = arith.mulf %111, %71 : vector<2x128xf32>
    %113 = vector.broadcast %8 : f32 to vector<2x128xf32>
    %114 = arith.mulf %113, %74 : vector<2x128xf32>
    %115 = arith.addf %112, %114 : vector<2x128xf32>
    %116 = vector.broadcast %9 : f32 to vector<2x128xf32>
    %117 = arith.mulf %116, %77 : vector<2x128xf32>
    %118 = arith.addf %115, %117 : vector<2x128xf32>
    %119 = vector.broadcast %10 : f32 to vector<2x128xf32>
    %120 = arith.mulf %119, %100 : vector<2x128xf32>
    %121 = arith.addf %118, %120 : vector<2x128xf32>
    %122 = vector.broadcast %11 : f32 to vector<2x128xf32>
    %123 = arith.mulf %122, %105 : vector<2x128xf32>
    %124 = arith.addf %121, %123 : vector<2x128xf32>
    %125 = vector.broadcast %12 : f32 to vector<2x128xf32>
    %126 = arith.mulf %125, %110 : vector<2x128xf32>
    %127 = arith.addf %124, %126 : vector<2x128xf32>
    %128 = vector.broadcast %28 : f32 to vector<2x128xf32>
    %129 = arith.addf %127, %128 : vector<2x128xf32>
    %130 = vector.broadcast %3 : f32 to vector<2x128xf32>
    %131 = arith.mulf %129, %130 : vector<2x128xf32>
    %132 = arith.subf %100, %131 : vector<2x128xf32>
    %133 = vector.broadcast %6 : f32 to vector<2x128xf32>
    %134 = arith.mulf %132, %133 : vector<2x128xf32>
    %135 = arith.subf %89, %129 : vector<2x128xf32>
    %136 = arith.mulf %135, %135 : vector<2x128xf32>
    %137 = arith.addf %62, %136 : vector<2x128xf32>
    %138 = arith.subf %134, %80 : vector<2x128xf32>
    %139 = arith.mulf %138, %138 : vector<2x128xf32>
    %140 = arith.addf %64, %139 : vector<2x128xf32>
    %141 = vector.broadcast %13 : f32 to vector<2x128xf32>
    %142 = arith.mulf %141, %71 : vector<2x128xf32>
    %143 = vector.broadcast %14 : f32 to vector<2x128xf32>
    %144 = arith.mulf %143, %74 : vector<2x128xf32>
    %145 = arith.addf %142, %144 : vector<2x128xf32>
    %146 = vector.broadcast %15 : f32 to vector<2x128xf32>
    %147 = arith.mulf %146, %77 : vector<2x128xf32>
    %148 = arith.addf %145, %147 : vector<2x128xf32>
    %149 = vector.broadcast %16 : f32 to vector<2x128xf32>
    %150 = arith.mulf %149, %100 : vector<2x128xf32>
    %151 = arith.addf %148, %150 : vector<2x128xf32>
    %152 = vector.broadcast %17 : f32 to vector<2x128xf32>
    %153 = arith.mulf %152, %105 : vector<2x128xf32>
    %154 = arith.addf %151, %153 : vector<2x128xf32>
    %155 = vector.broadcast %18 : f32 to vector<2x128xf32>
    %156 = arith.mulf %155, %110 : vector<2x128xf32>
    %157 = arith.addf %154, %156 : vector<2x128xf32>
    %158 = vector.broadcast %32 : f32 to vector<2x128xf32>
    %159 = arith.addf %157, %158 : vector<2x128xf32>
    %160 = vector.broadcast %3 : f32 to vector<2x128xf32>
    %161 = arith.mulf %159, %160 : vector<2x128xf32>
    %162 = arith.subf %105, %161 : vector<2x128xf32>
    %163 = vector.broadcast %6 : f32 to vector<2x128xf32>
    %164 = arith.mulf %162, %163 : vector<2x128xf32>
    %165 = arith.subf %92, %159 : vector<2x128xf32>
    %166 = arith.mulf %165, %165 : vector<2x128xf32>
    %167 = arith.addf %137, %166 : vector<2x128xf32>
    %168 = arith.subf %164, %83 : vector<2x128xf32>
    %169 = arith.mulf %168, %168 : vector<2x128xf32>
    %170 = arith.addf %140, %169 : vector<2x128xf32>
    %171 = vector.broadcast %19 : f32 to vector<2x128xf32>
    %172 = arith.mulf %171, %71 : vector<2x128xf32>
    %173 = vector.broadcast %20 : f32 to vector<2x128xf32>
    %174 = arith.mulf %173, %74 : vector<2x128xf32>
    %175 = arith.addf %172, %174 : vector<2x128xf32>
    %176 = vector.broadcast %21 : f32 to vector<2x128xf32>
    %177 = arith.mulf %176, %77 : vector<2x128xf32>
    %178 = arith.addf %175, %177 : vector<2x128xf32>
    %179 = vector.broadcast %22 : f32 to vector<2x128xf32>
    %180 = arith.mulf %179, %100 : vector<2x128xf32>
    %181 = arith.addf %178, %180 : vector<2x128xf32>
    %182 = vector.broadcast %23 : f32 to vector<2x128xf32>
    %183 = arith.mulf %182, %105 : vector<2x128xf32>
    %184 = arith.addf %181, %183 : vector<2x128xf32>
    %185 = vector.broadcast %24 : f32 to vector<2x128xf32>
    %186 = arith.mulf %185, %110 : vector<2x128xf32>
    %187 = arith.addf %184, %186 : vector<2x128xf32>
    %188 = vector.broadcast %36 : f32 to vector<2x128xf32>
    %189 = arith.addf %187, %188 : vector<2x128xf32>
    %190 = vector.broadcast %3 : f32 to vector<2x128xf32>
    %191 = arith.mulf %189, %190 : vector<2x128xf32>
    %192 = arith.subf %110, %191 : vector<2x128xf32>
    %193 = vector.broadcast %6 : f32 to vector<2x128xf32>
    %194 = arith.mulf %192, %193 : vector<2x128xf32>
    %195 = arith.subf %95, %189 : vector<2x128xf32>
    %196 = arith.mulf %195, %195 : vector<2x128xf32>
    %197 = arith.addf %167, %196 : vector<2x128xf32>
    %198 = arith.subf %194, %86 : vector<2x128xf32>
    %199 = arith.mulf %198, %198 : vector<2x128xf32>
    %200 = arith.addf %170, %199 : vector<2x128xf32>
    %201 = vector.broadcast %37 : f32 to vector<2x128xf32>
    %202 = arith.mulf %201, %134 : vector<2x128xf32>
    %203 = vector.broadcast %38 : f32 to vector<2x128xf32>
    %204 = arith.mulf %203, %164 : vector<2x128xf32>
    %205 = arith.addf %202, %204 : vector<2x128xf32>
    %206 = vector.broadcast %39 : f32 to vector<2x128xf32>
    %207 = arith.mulf %206, %194 : vector<2x128xf32>
    %208 = arith.addf %205, %207 : vector<2x128xf32>
    %209 = vector.broadcast %40 : f32 to vector<2x128xf32>
    %210 = arith.mulf %209, %71 : vector<2x128xf32>
    %211 = arith.addf %208, %210 : vector<2x128xf32>
    %212 = vector.broadcast %41 : f32 to vector<2x128xf32>
    %213 = arith.mulf %212, %74 : vector<2x128xf32>
    %214 = arith.addf %211, %213 : vector<2x128xf32>
    %215 = vector.broadcast %42 : f32 to vector<2x128xf32>
    %216 = arith.mulf %215, %77 : vector<2x128xf32>
    %217 = arith.addf %214, %216 : vector<2x128xf32>
    %218 = vector.broadcast %55 : f32 to vector<2x128xf32>
    %219 = arith.addf %217, %218 : vector<2x128xf32>
    %220 = arith.subf %219, %80 : vector<2x128xf32>
    %221 = math.absf %220 : vector<2x128xf32>
    %222 = arith.addf %66, %221 : vector<2x128xf32>
    %223 = vector.broadcast %43 : f32 to vector<2x128xf32>
    %224 = arith.mulf %223, %134 : vector<2x128xf32>
    %225 = vector.broadcast %44 : f32 to vector<2x128xf32>
    %226 = arith.mulf %225, %164 : vector<2x128xf32>
    %227 = arith.addf %224, %226 : vector<2x128xf32>
    %228 = vector.broadcast %45 : f32 to vector<2x128xf32>
    %229 = arith.mulf %228, %194 : vector<2x128xf32>
    %230 = arith.addf %227, %229 : vector<2x128xf32>
    %231 = vector.broadcast %46 : f32 to vector<2x128xf32>
    %232 = arith.mulf %231, %71 : vector<2x128xf32>
    %233 = arith.addf %230, %232 : vector<2x128xf32>
    %234 = vector.broadcast %47 : f32 to vector<2x128xf32>
    %235 = arith.mulf %234, %74 : vector<2x128xf32>
    %236 = arith.addf %233, %235 : vector<2x128xf32>
    %237 = vector.broadcast %48 : f32 to vector<2x128xf32>
    %238 = arith.mulf %237, %77 : vector<2x128xf32>
    %239 = arith.addf %236, %238 : vector<2x128xf32>
    %240 = vector.broadcast %56 : f32 to vector<2x128xf32>
    %241 = arith.addf %239, %240 : vector<2x128xf32>
    %242 = arith.subf %241, %83 : vector<2x128xf32>
    %243 = math.absf %242 : vector<2x128xf32>
    %244 = arith.addf %222, %243 : vector<2x128xf32>
    %245 = vector.broadcast %49 : f32 to vector<2x128xf32>
    %246 = arith.mulf %245, %134 : vector<2x128xf32>
    %247 = vector.broadcast %50 : f32 to vector<2x128xf32>
    %248 = arith.mulf %247, %164 : vector<2x128xf32>
    %249 = arith.addf %246, %248 : vector<2x128xf32>
    %250 = vector.broadcast %51 : f32 to vector<2x128xf32>
    %251 = arith.mulf %250, %194 : vector<2x128xf32>
    %252 = arith.addf %249, %251 : vector<2x128xf32>
    %253 = vector.broadcast %52 : f32 to vector<2x128xf32>
    %254 = arith.mulf %253, %71 : vector<2x128xf32>
    %255 = arith.addf %252, %254 : vector<2x128xf32>
    %256 = vector.broadcast %53 : f32 to vector<2x128xf32>
    %257 = arith.mulf %256, %74 : vector<2x128xf32>
    %258 = arith.addf %255, %257 : vector<2x128xf32>
    %259 = vector.broadcast %54 : f32 to vector<2x128xf32>
    %260 = arith.mulf %259, %77 : vector<2x128xf32>
    %261 = arith.addf %258, %260 : vector<2x128xf32>
    %262 = vector.broadcast %57 : f32 to vector<2x128xf32>
    %263 = arith.addf %261, %262 : vector<2x128xf32>
    %264 = arith.subf %263, %86 : vector<2x128xf32>
    %265 = math.absf %264 : vector<2x128xf32>
    %266 = arith.addf %244, %265 : vector<2x128xf32>
    %c1_i32 = arith.constant 1 : i32
    %c0_113 = arith.constant 0 : index
    %c0_114 = arith.constant 0 : index
    %c0_115 = arith.constant 0 : index
    %267 = vector.load %arg13[%c0_113, %c0_114, %c0_115] : memref<3x2x128xf32, #tpu.memory_space<vmem>>, vector<1x2x128xf32>
    %268 = vector.shape_cast %267 : vector<1x2x128xf32> to vector<2x128xf32>
    %269 = vector.shape_cast %197 : vector<2x128xf32> to vector<1x2x128xf32>
    tpu.vector_store %arg13[%c0_113, %c0_114, %c0_115], %269 {strides = array<i32>} : memref<3x2x128xf32, #tpu.memory_space<vmem>>, vector<1x2x128xf32>,
    %c1_116 = arith.constant 1 : index
    %c0_117 = arith.constant 0 : index
    %c0_118 = arith.constant 0 : index
    %270 = vector.load %arg13[%c1_116, %c0_117, %c0_118] : memref<3x2x128xf32, #tpu.memory_space<vmem>>, vector<1x2x128xf32>
    %271 = vector.shape_cast %270 : vector<1x2x128xf32> to vector<2x128xf32>
    %272 = vector.shape_cast %200 : vector<2x128xf32> to vector<1x2x128xf32>
    tpu.vector_store %arg13[%c1_116, %c0_117, %c0_118], %272 {strides = array<i32>} : memref<3x2x128xf32, #tpu.memory_space<vmem>>, vector<1x2x128xf32>,
    %c2_119 = arith.constant 2 : index
    %c0_120 = arith.constant 0 : index
    %c0_121 = arith.constant 0 : index
    %273 = vector.load %arg13[%c2_119, %c0_120, %c0_121] : memref<3x2x128xf32, #tpu.memory_space<vmem>>, vector<1x2x128xf32>
    %274 = vector.shape_cast %273 : vector<1x2x128xf32> to vector<2x128xf32>
    %275 = vector.shape_cast %266 : vector<2x128xf32> to vector<1x2x128xf32>
    tpu.vector_store %arg13[%c2_119, %c0_120, %c0_121], %275 {strides = array<i32>} : memref<3x2x128xf32, #tpu.memory_space<vmem>>, vector<1x2x128xf32>,
    %c0_i32_122 = arith.constant 0 : i32
    %276 = arith.cmpi eq, %arg1, %c0_i32_122 : i32
    %277 = arith.extui %276 : i1 to i32
    %c0_i32_123 = arith.constant 0 : i32
    %278 = arith.cmpi ne, %277, %c0_i32_123 : i32
    scf.if %278 {
      %cst_124 = arith.constant 0.000000e+00 : f32
      %279 = vector.broadcast %cst_124 : f32 to vector<8x128xf32>
      %c0_125 = arith.constant 0 : index
      %c0_126 = arith.constant 0 : index
      %c0_127 = arith.constant 0 : index
      %280 = vector.load %arg12[%c0_125, %c0_126, %c0_127] : memref<1x8x128xf32, #tpu.memory_space<vmem>>, vector<1x8x128xf32>
      %281 = vector.shape_cast %280 : vector<1x8x128xf32> to vector<8x128xf32>
      %282 = vector.shape_cast %279 : vector<8x128xf32> to vector<1x8x128xf32>
      tpu.vector_store %arg12[%c0_125, %c0_126, %c0_127], %282 {strides = array<i32>} : memref<1x8x128xf32, #tpu.memory_space<vmem>>, vector<1x8x128xf32>,
      %283 = vector.shape_cast %197 : vector<2x128xf32> to vector<1x2x128xf32>
      %cst_128 = arith.constant dense<0.000000e+00> : vector<1xf32>
      %284 = vector.multi_reduction <add>, %283, %cst_128 [1, 2] : vector<1x2x128xf32> to vector<1xf32>
      %285 = vector.shape_cast %284 : vector<1xf32> to vector<1x1x1xf32>
      %286 = vector.extract %285[0, 0, 0] : f32 from vector<1x1x1xf32>
      %287 = vector.broadcast %286 : f32 to vector<1x128xf32>
      %c0_129 = arith.constant 0 : index
      %c0_130 = arith.constant 0 : index
      %c0_131 = arith.constant 0 : index
      %288 = vector.load %arg12[%c0_129, %c0_130, %c0_131] : memref<1x8x128xf32, #tpu.memory_space<vmem>>, vector<1x1x128xf32>
      %289 = vector.shape_cast %288 : vector<1x1x128xf32> to vector<1x128xf32>
      %290 = vector.shape_cast %287 : vector<1x128xf32> to vector<1x1x128xf32>
      tpu.vector_store %arg12[%c0_129, %c0_130, %c0_131], %290 {strides = array<i32>} : memref<1x8x128xf32, #tpu.memory_space<vmem>>, vector<1x1x128xf32>,
      %291 = vector.shape_cast %200 : vector<2x128xf32> to vector<1x2x128xf32>
      %cst_132 = arith.constant dense<0.000000e+00> : vector<1xf32>
      %292 = vector.multi_reduction <add>, %291, %cst_132 [1, 2] : vector<1x2x128xf32> to vector<1xf32>
      %293 = vector.shape_cast %292 : vector<1xf32> to vector<1x1x1xf32>
      %294 = vector.extract %293[0, 0, 0] : f32 from vector<1x1x1xf32>
      %295 = vector.broadcast %294 : f32 to vector<1x128xf32>
      %c0_133 = arith.constant 0 : index
      %c1_134 = arith.constant 1 : index
      %c0_135 = arith.constant 0 : index
      %296 = vector.load %arg12[%c0_133, %c1_134, %c0_135] : memref<1x8x128xf32, #tpu.memory_space<vmem>>, vector<1x1x128xf32>
      %297 = vector.shape_cast %296 : vector<1x1x128xf32> to vector<1x128xf32>
      %298 = vector.shape_cast %295 : vector<1x128xf32> to vector<1x1x128xf32>
      tpu.vector_store %arg12[%c0_133, %c1_134, %c0_135], %298 {strides = array<i32>} : memref<1x8x128xf32, #tpu.memory_space<vmem>>, vector<1x1x128xf32>,
      %299 = vector.shape_cast %266 : vector<2x128xf32> to vector<1x2x128xf32>
      %cst_136 = arith.constant dense<0.000000e+00> : vector<1xf32>
      %300 = vector.multi_reduction <add>, %299, %cst_136 [1, 2] : vector<1x2x128xf32> to vector<1xf32>
      %301 = vector.shape_cast %300 : vector<1xf32> to vector<1x1x1xf32>
      %302 = vector.extract %301[0, 0, 0] : f32 from vector<1x1x1xf32>
      %303 = vector.broadcast %302 : f32 to vector<1x128xf32>
      %c0_137 = arith.constant 0 : index
      %c2_138 = arith.constant 2 : index
      %c0_139 = arith.constant 0 : index
      %304 = vector.load %arg12[%c0_137, %c2_138, %c0_139] : memref<1x8x128xf32, #tpu.memory_space<vmem>>, vector<1x1x128xf32>
      %305 = vector.shape_cast %304 : vector<1x1x128xf32> to vector<1x128xf32>
      %306 = vector.shape_cast %303 : vector<1x128xf32> to vector<1x1x128xf32>
      tpu.vector_store %arg12[%c0_137, %c2_138, %c0_139], %306 {strides = array<i32>} : memref<1x8x128xf32, #tpu.memory_space<vmem>>, vector<1x1x128xf32>,
    } else {
    }
    return
  }
  func.func @transform_0(%arg0: i32, %arg1: i32) -> (i32, i32, i32, i32) {
    %c0_i32 = arith.constant 0 : i32
    %c0_i32_0 = arith.constant 0 : i32
    %c0_i32_1 = arith.constant 0 : i32
    return %arg0, %c0_i32, %arg1, %c0_i32_0 : i32, i32, i32, i32
  }
  func.func @transform_1(%arg0: i32, %arg1: i32) -> (i32, i32, i32, i32) {
    %c0_i32 = arith.constant 0 : i32
    %c0_i32_0 = arith.constant 0 : i32
    %c0_i32_1 = arith.constant 0 : i32
    return %arg0, %c0_i32, %arg1, %c0_i32_0 : i32, i32, i32, i32
  }
  func.func @transform_2(%arg0: i32, %arg1: i32) -> i32 {
    %c0_i32 = arith.constant 0 : i32
    %c0_i32_0 = arith.constant 0 : i32
    return %c0_i32 : i32
  }
  func.func @transform_3(%arg0: i32, %arg1: i32) -> i32 {
    %c0_i32 = arith.constant 0 : i32
    %c0_i32_0 = arith.constant 0 : i32
    return %c0_i32 : i32
  }
  func.func @transform_4(%arg0: i32, %arg1: i32) -> i32 {
    %c0_i32 = arith.constant 0 : i32
    %c0_i32_0 = arith.constant 0 : i32
    return %c0_i32 : i32
  }
  func.func @transform_5(%arg0: i32, %arg1: i32) -> (i32, i32) {
    %c0_i32 = arith.constant 0 : i32
    %c0_i32_0 = arith.constant 0 : i32
    %c0_i32_1 = arith.constant 0 : i32
    return %c0_i32, %c0_i32_0 : i32, i32
  }
  func.func @transform_6(%arg0: i32, %arg1: i32) -> i32 {
    %c0_i32 = arith.constant 0 : i32
    %c0_i32_0 = arith.constant 0 : i32
    return %c0_i32 : i32
  }
  func.func @transform_7(%arg0: i32, %arg1: i32) -> i32 {
    %c0_i32 = arith.constant 0 : i32
    %c0_i32_0 = arith.constant 0 : i32
    return %c0_i32 : i32
  }
  func.func @transform_8(%arg0: i32, %arg1: i32) -> (i32, i32) {
    %c0_i32 = arith.constant 0 : i32
    %c0_i32_0 = arith.constant 0 : i32
    %c0_i32_1 = arith.constant 0 : i32
    return %c0_i32, %c0_i32_0 : i32, i32
  }
  func.func @transform_9(%arg0: i32, %arg1: i32) -> i32 {
    %c0_i32 = arith.constant 0 : i32
    %c0_i32_0 = arith.constant 0 : i32
    return %c0_i32 : i32
  }
  func.func @transform_10(%arg0: i32, %arg1: i32) -> (i32, i32, i32) {
    %c0_i32 = arith.constant 0 : i32
    %c0_i32_0 = arith.constant 0 : i32
    %c0_i32_1 = arith.constant 0 : i32
    return %arg0, %c0_i32, %c0_i32_0 : i32, i32, i32
  }
}

</mosaic_0001>

<bundles_post_ra>
// kernel: tpu_custom_call.1
= control target key start
LH: loop header
LB: loop body
LE: loop exit
PB: predicated region body
PF: predicated region fallthrough
CT: control target
= control target key end

     0   :  { %s2221_s0 = inlined_call_operand.hbm [shape: f32[2,6,2,128], index: 0, kind: input, shape index: {}]   ;;  %s2222_s1 = inlined_call_operand.hbm [shape: f32[2,3,2,128], index: 1, kind: input, shape index: {}]   ;;  %s2223_s2 = inlined_call_operand.vmem [shape: f32[2], index: 2, kind: input, shape index: {}]   ;;  %s2224_s3 = inlined_call_operand.vmem [shape: f32[2], index: 3, kind: input, shape index: {}]   ;;  %s2225_s4 = inlined_call_operand.vmem [shape: f32[2], index: 4, kind: input, shape index: {}]   ;;  %s2226_s5 = inlined_call_operand.vmem [shape: f32[3,6], index: 5, kind: input, shape index: {}]   ;;  %s2227_s6 = inlined_call_operand.vmem [shape: f32[3], index: 6, kind: input, shape index: {}]   ;;  %s2228_s7 = inlined_call_operand.vmem [shape: f32[3], index: 7, kind: input, shape index: {}]   ;;  %s2229_s8 = inlined_call_operand.vmem [shape: f32[3,6], index: 8, kind: input, shape index: {}]   ;;  %s2230_s9 = inlined_call_operand.vmem [shape: f32[3], index: 9, kind: input, shape index: {}]   ;;  %s2231_s10 = inlined_call_operand.hbm [shape: f32[2,8,128], index: 10, kind: output, shape index: {}]  }
   0x1   :  { %2238 = sst [smem:[#allocation31_spill]] %s2221_s0 }
   0x2   :  { %2239 = sst [smem:[#allocation32_spill]] %s2222_s1 }
   0x3   :  { %2240 = sst [smem:[#allocation33_spill]] %s2223_s2 }
   0x4   :  { %2241 = sst [smem:[#allocation34_spill]] %s2224_s3 }
   0x5   :  { %2242 = sst [smem:[#allocation35_spill]] %s2225_s4 }
   0x6   :  { %2243 = sst [smem:[#allocation36_spill]] %s2226_s5 }
   0x7   :  { %2244 = sst [smem:[#allocation37_spill]] %s2227_s6 }
   0x8   :  { %2245 = sst [smem:[#allocation38_spill]] %s2228_s7 }
   0x9   :  { %2246 = sst [smem:[#allocation39_spill]] %s2229_s8 }
   0xa   :  { %2247 = sst [smem:[#allocation40_spill]] %s2230_s9 }
   0xb   :  { %15 = vsyncpa [#allocation4], 0 }
   0xc   :  { %17 = vsyncpa [#allocation4 + $0x1], 0 }
   0xd   :  { %18 = vsyncpa [#allocation8], 0 }
   0xe   :  { %20 = vsyncpa [#allocation8 + $0x1], 0 }
   0xf   :  { %21 = vsyncpa [#allocation6], 0 }
  0x10   :  { %22 = vsyncpa [#allocation11], 0 }
  0x11   :  { %23 = vsyncpa [#allocation14], 0 }
  0x12   :  { %24 = vsyncpa [#allocation17], 0 }
  0x13   :  { %25 = vsyncpa [#allocation20], 0 }
  0x14   :  { %26 = vsyncpa [#allocation5], 0 }
  0x15   :  { %28 = vsyncpa [#allocation5 + $0x1], 0  ;;  %s1638_s13 = smov 0   ;;  %s1640_s14 = smov 0  }
  0x16   :  { %s1642_s15 = smov 0   ;;  %s1644_s16 = smov 0  }
  0x17   :  { %s1646_s17 = smov 0   ;;  %s1648_s18 = smov 0  }
  0x18 LB: > { %s2248_s3 = sld [smem:[#allocation34_spill]]  ;;  %s2235_s22 = sadd.s32 4294967295, %s1567_s18   ;;  %s1567_s18 = sphi %s1648_s18, %s34_s18   ;;  %s1563_s17 = sphi %s1646_s17, %s2280_s17   ;;  %s1559_s16 = sphi %s1644_s16, %s2279_s16   ;;  %s1555_s15 = sphi %s1642_s15, %s2278_s15   ;;  %s1551_s14 = sphi %s1640_s14, %s2277_s14   ;;  %s1547_s13 = sphi %s1638_s13, %s2276_s13  }
  0x19   : > { %p1041_p0 = scmp.ge.s32.totalorder %s1567_s18, 1  ;;  %p1675_p1 = scmp.eq.s32.totalorder %s2235_s22, 0 }
  0x1a   : > { %p301_p2 = scmp.lt.s32.totalorder %s1567_s18, 3  ;;  %s2251_s5 = sld [smem:[#allocation36_spill]] }
  0x1b   : > { %s2249_s23 = scalar_select %p1675_p1, 1, 0 }
  0x1c   : > { %p1680_p3 = pnand %p1041_p0, %p301_p2  ;;  %s2252_s7 = sld [smem:[#allocation38_spill]] }
  0x1d   : > { %s2254_s2 = sld [smem:[#allocation33_spill]] }
  0x1e   : > { %s325_s21 = sshll.u32 %s2248_s3, 4  ;;  %p1166_p5 = pneg %p1680_p3  ;;  %s326_s21 = int_to_ptr.vmem [resolvable:$true] %s325_s21 }
  0x1f   : > { %s2250_s24 = scalar_select %p1680_p3, 1, 0 }
  0x20   : > { %s347_s27 = sshll.u32 %s2251_s5, 4  ;;  %p1695_p6 = pnand %p1166_p5, %p1675_p1  ;;  %s348_s27 = int_to_ptr.vmem [resolvable:$true] %s347_s27 }
  0x21   : > { %s1281_s25 = scalar_lea.vmem %s326_s21, 16  ;;  %p1289_p11 = scmp.lt.s32.totalorder %s326_s21, %s326_s21 }
  0x22   : > { %s369_s30 = sshll.u32 %s2252_s7, 4  ;;  %p1282_p7 = scmp.ne.s32.totalorder %s326_s21, %s1281_s25  ;;  %s1699_s30 = int_to_ptr.vmem [resolvable:$true] %s369_s30 }
  0x23   : > { %s314_s20 = sshll.u32 %s2254_s2, 4  ;;  %p1706_p8 = pneg %p1695_p6  ;;  %s315_s20 = int_to_ptr.vmem [resolvable:$true] %s314_s20 }
  0x24   : > { %p1290_p12 = scmp.lt.s32.totalorder %s1281_s25, %s1281_s25 }
  0x25   : > { %p1284_p9 = pnand %p1706_p8, %p1282_p7 }
  0x26   : > { %p1291_p13 = por %p1290_p12, %p1289_p11 }
  0x27   : > { %p1285_p10 = pneg %p1284_p9 }
  0x29   : > { %p1292_p0 = pnand %p1291_p13, %p1285_p10 }
  0x2b   : > { %1295 = shalt.err (!%p1292_p0)
}
  0x2c   : > { %s1569_s28 = smov [#allocation10]   ;;  %s1296_s29 = scalar_lea.vmem %s348_s27, 64 }
  0x2d   : > { %1172 = dma.vmem_to_smem (!%p1695_p6), %s326_s21, 16, %s1569_s28, [#allocation11]  }
  0x2e   : > { %p1297_p2 = scmp.ne.s32.totalorder %s348_s27, %s1296_s29  ;;  %p1304_p3 = scmp.lt.s32.totalorder %s348_s27, %s348_s27 }
  0x2f   : > { %p1305_p1 = scmp.lt.s32.totalorder %s1296_s29, %s1296_s29 }
  0x30   : > { %p1299_p5 = pnand %p1297_p2, %p1706_p8 }
  0x31   : > { %p1306_p7 = por %p1305_p1, %p1304_p3 }
  0x32   : > { %p1300_p4 = pneg %p1299_p5 }
  0x34   : > { %p1307_p9 = pnand %p1306_p7, %p1300_p4 }
  0x36   : > { %1310 = shalt.err (!%p1307_p9)
}
  0x37   : > { %s1570_s12 = smov [#allocation13]   ;;  %s1311_s19 = scalar_lea.vmem %s1699_s30, 16 }
  0x38   : > { %1178 = dma.vmem_to_smem (!%p1695_p6), %s348_s27, 64, %s1570_s12, [#allocation14]  }
  0x39   : > { %p1312_p10 = scmp.ne.s32.totalorder %s1699_s30, %s1311_s19  ;;  %p1319_p13 = scmp.lt.s32.totalorder %s1699_s30, %s1699_s30 }
  0x3a   : > { %p1320_p0 = scmp.lt.s32.totalorder %s1311_s19, %s1311_s19 }
  0x3b   : > { %p1314_p11 = pnand %p1312_p10, %p1706_p8 }
  0x3c   : > { %p1321_p2 = por %p1320_p0, %p1319_p13 }
  0x3d   : > { %p1315_p12 = pneg %p1314_p11 }
  0x3f   : > { %p1322_p1 = pnand %p1321_p2, %p1315_p12 }
  0x41   : > { %1325 = shalt.err (!%p1322_p1)
}
  0x42   : > { %s1571_s21 = smov [#allocation16]   ;;  %s1326_s27 = scalar_lea.vmem %s315_s20, 16 }
  0x43   : > { %1184 = dma.vmem_to_smem (!%p1695_p6), %s1699_s30, 16, %s1571_s21, [#allocation17]  }
  0x44   : > { %p1327_p3 = scmp.ne.s32.totalorder %s315_s20, %s1326_s27  ;;  %p1334_p7 = scmp.lt.s32.totalorder %s315_s20, %s315_s20 }
  0x45   : > { %p1335_p9 = scmp.lt.s32.totalorder %s1326_s27, %s1326_s27 }
  0x46   : > { %p1329_p4 = pnand %p1327_p3, %p1706_p8 }
  0x47   : > { %p1336_p10 = por %p1335_p9, %p1334_p7 }
  0x48   : > { %p1330_p5 = pneg %p1329_p4 }
  0x4a   : > { %p1337_p11 = pnand %p1336_p10, %p1330_p5 }
  0x4c   : > { %1340 = shalt.err (!%p1337_p11)
}
  0x4d   : > { %s1572_s29 = smov [#allocation9]   ;;  %s2256_s4 = sld [smem:[#allocation35_spill]] }
  0x4e   : > { %1169 = dma.vmem_to_smem (!%p1695_p6), %s315_s20, 16, %s1572_s29, [#allocation6]  }
  0x4f   : > { %s2257_s6 = sld [smem:[#allocation37_spill]] }
  0x53   : > { %s336_s19 = sshll.u32 %s2256_s4, 4  ;;  %s337_s19 = int_to_ptr.vmem [resolvable:$true] %s336_s19 }
  0x54   : > { %s1341_s22 = scalar_lea.vmem %s337_s19, 16  ;;  %p1349_p2 = scmp.lt.s32.totalorder %s337_s19, %s337_s19 }
  0x55   : > { %s358_s28 = sshll.u32 %s2257_s6, 4  ;;  %p1342_p12 = scmp.ne.s32.totalorder %s337_s19, %s1341_s22  ;;  %s359_s28 = int_to_ptr.vmem [resolvable:$true] %s358_s28 }
  0x56   : > { %p1350_p1 = scmp.lt.s32.totalorder %s1341_s22, %s1341_s22 }
  0x57   : > { %p1344_p13 = pnand %p1342_p12, %p1706_p8 }
  0x58   : > { %p1351_p3 = por %p1350_p1, %p1349_p2 }
  0x59   : > { %p1345_p0 = pneg %p1344_p13 }
  0x5b   : > { %p1352_p4 = pnand %p1351_p3, %p1345_p0 }
  0x5d   : > { %1355 = shalt.err (!%p1352_p4)
}
  0x5e   : > { %s1573_s20 = smov [#allocation12]   ;;  %s1356_s27 = scalar_lea.vmem %s359_s28, 16 }
  0x5f   : > { %1175 = dma.vmem_to_smem (!%p1695_p6), %s337_s19, 16, %s1573_s20, [#allocation11]  }
  0x60   : > { %p1357_p5 = scmp.ne.s32.totalorder %s359_s28, %s1356_s27  ;;  %p1364_p10 = scmp.lt.s32.totalorder %s359_s28, %s359_s28 }
  0x61   : > { %p1365_p11 = scmp.lt.s32.totalorder %s1356_s27, %s1356_s27 }
  0x62   : > { %p1359_p7 = pnand %p1357_p5, %p1706_p8 }
  0x63   : > { %p1366_p12 = por %p1365_p11, %p1364_p10 }
  0x64   : > { %p1360_p9 = pneg %p1359_p7 }
  0x66   : > { %p1367_p13 = pnand %p1366_p12, %p1360_p9 }
  0x68   : > { %1370 = shalt.err (!%p1367_p13)
}
  0x69   : > { %s1574_s22 = smov [#allocation15]   ;;  %s2258_s8 = sld [smem:[#allocation39_spill]] }
  0x6a   : > { %1181 = dma.vmem_to_smem (!%p1695_p6), %s359_s28, 16, %s1574_s22, [#allocation14]  }
  0x6b   : > { %s2259_s9 = sld [smem:[#allocation40_spill]] }
  0x6f   : > { %s380_s12 = sshll.u32 %s2258_s8, 4  ;;  %s381_s12 = int_to_ptr.vmem [resolvable:$true] %s380_s12 }
  0x70   : > { %s1371_s20 = scalar_lea.vmem %s381_s12, 64  ;;  %p1379_p3 = scmp.lt.s32.totalorder %s381_s12, %s381_s12 }
  0x71   : > { %s391_s25 = sshll.u32 %s2259_s9, 4  ;;  %p1372_p0 = scmp.ne.s32.totalorder %s381_s12, %s1371_s20  ;;  %s392_s25 = int_to_ptr.vmem [resolvable:$true] %s391_s25 }
  0x72   : > { %p1380_p4 = scmp.lt.s32.totalorder %s1371_s20, %s1371_s20 }
  0x73   : > { %p1374_p2 = pnand %p1372_p0, %p1706_p8 }
  0x74   : > { %p1381_p5 = por %p1380_p4, %p1379_p3 }
  0x75   : > { %p1375_p1 = pneg %p1374_p2 }
  0x77   : > { %p1382_p7 = pnand %p1381_p5, %p1375_p1 }
  0x79   : > { %1385 = shalt.err (!%p1382_p7)
}
  0x7a   : > { %s1575_s28 = smov [#allocation18]   ;;  %s1386_s27 = scalar_lea.vmem %s392_s25, 16 }
  0x7b   : > { %1187 = dma.vmem_to_smem (!%p1695_p6), %s381_s12, 64, %s1575_s28, [#allocation17]  }
  0x7c   : > { %p1387_p9 = scmp.ne.s32.totalorder %s392_s25, %s1386_s27  ;;  %p1394_p12 = scmp.lt.s32.totalorder %s392_s25, %s392_s25 }
  0x7d   : > { %p1395_p13 = scmp.lt.s32.totalorder %s1386_s27, %s1386_s27 }
  0x7e   : > { %p1389_p10 = pnand %p1387_p9, %p1706_p8 }
  0x7f   : > { %p1396_p0 = por %p1395_p13, %p1394_p12 }
  0x80   : > { %p1390_p11 = pneg %p1389_p10 }
  0x82   : > { %p1397_p2 = pnand %p1396_p0, %p1390_p11 }
  0x84   : > { %1400 = shalt.err (!%p1397_p2)
}
  0x85   : > { %s1576_s22 = smov [#allocation19]   ;;  %s1040_s26 = sadd.s32 4294967294, %s1567_s18  }
  0x86   : > { %1190 = dma.vmem_to_smem (!%p1695_p6), %s392_s25, 16, %s1576_s22, [#allocation20]  }
  0x87   : > { %s46_s29 = sadd.s32 1, %s1563_s17  ;;  %s55_s30 = sadd.s32 1, %s1555_s15 }
  0x88   : > { %p48_p8 = scmp.ge.s32.totalorder %s46_s29, 2  ;;  %p62_p1 = scmp.ne.s32.totalorder %s1555_s15, %s1551_s14 }
  0x89   : > { %p63_p3 = scmp.eq.s32.totalorder %s1567_s18, 0  ;;  %p68_p5 = scmp.ne.s32.totalorder %s1551_s14, %s1547_s13 }
  0x8a   : > { %s2282_s29 = smov (%p48_p8, %s46_s29), 0  ;;  %s2262_s19 = sadd.s32 4294967295, %s1567_s18  }
  0x8b   : > { %2260 = sst [smem:[#allocation30_spill]] %s2282_s29  ;;  %p1771_p4 = por %p63_p3, %p62_p1 }
  0x8c   : > { %s50_s12 = ssub.s32 %s1563_s17, %s2282_s29  ;;  %p288_p6 = scmp.eq.s32.totalorder %s2262_s19, 1 }
  0x8d   : > { %p53_p7 = scmp.eq.s32.totalorder %s50_s12, 0  ;;  %p2263_p9 = scmp.ne.s32.totalorder %s2249_s23, 0 }
  0x8e   : > { %p1787_p11 = por %p288_p6, %p62_p1  ;;  %p294_p12 = scmp.eq.s32.totalorder %s1040_s26, 1 }
  0x8f   : > { %p1783_p10 = por %p2263_p9, %p68_p5  ;;  %p1210_p0 = scmp.lt.s32.totalorder %s1567_s18, 2 }
  0x90   : > { %s2265_s25 = scalar_select %p1787_p11, 1, 0 }
  0x91   : > { %s1792_s20 = scalar_select %p53_p7, %s1555_s15, %s55_s30  }
  0x92   : > { %p1794_p13 = por %p294_p12, %p68_p5  ;;  %s1800_s27 = sand.u32 1, %s1555_s15  }
  0x93   : > { %s1115_s22 = smul.u32 192, %s1563_s17  ;;  %s2267_s0 = sld [smem:[#allocation31_spill]] }
  0x94   : > { %s2266_s28 = scalar_select %p1794_p13, 1, 0 }
  0x95   : > { %s1114_s12 = smul.u32 12, %s1800_s27  ;;  %p1811_p2 = pnand %p1210_p0, %p1771_p4 }
  0x96   : > { %s403_s5 = scalar_lea.sflag [#allocation4], %s1800_s27 }
  0x97   : > { %s406_s30 = scalar_lea.vmem [#allocation3], %s1114_s12  ;;  %p1403_p1 = pneg %p1811_p2 }
  0x98   : > { %s414_s4 = sshll.u32 %s406_s30, 4  ;;  %s1815_s4 = int_to_ptr.vmem [resolvable:$true] %s414_s4 }
  0x99   : > { %s1807_s3 = scalar_lea.hbm %s2267_s0, %s1115_s22  ;;  %s1406_s22 = scalar_lea.hbm %s2267_s0, 384 }
  0x9a   : > { %s1401_s6 = scalar_lea.hbm %s1807_s3, 192  ;;  %p1407_p4 = scmp.lt.u32.totalorder %s1807_s3, %s2267_s0 }
  0x9b   : > { %p1402_p8 = scmp.ne.s32.totalorder %s1807_s3, %s1401_s6  ;;  %p1408_p6 = scmp.lt.u32.totalorder %s1406_s22, %s1401_s6 }
  0x9c   : > { %p1410_p9 = scmp.lt.u32.totalorder %s1401_s6, %s1807_s3 }
  0x9d   : > { %p1404_p3 = pnand %p1403_p1, %p1402_p8  ;;  %p1409_p7 = por %p1408_p6, %p1407_p4 }
  0x9f   : > { %p1405_p5 = pneg %p1404_p3  ;;  %p1411_p12 = por %p1410_p9, %p1409_p7 }
  0xa1   : > { %p1412_p0 = pnand %p1411_p12, %p1405_p5 }
  0xa3   : > { %1415 = shalt.err (!%p1412_p0)
}
  0xa4   : > { %s1416_s12 = scalar_lea.vmem %s1815_s4, 192  ;;  %s1577_s30 = smov [#allocation3]  }
  0xa5   : > { %p1417_p8 = scmp.ne.s32.totalorder %s1815_s4, %s1416_s12  ;;  %s1421_s2 = sshll.u32 %s1577_s30, 4  ;;  %s1422_s2 = int_to_ptr.vmem [resolvable:$false] %s1421_s2 }
  0xa6   : > { %s1423_s7 = scalar_lea.vmem %s1422_s2, 384  ;;  %p1424_p11 = scmp.lt.s32.totalorder %s1815_s4, %s1422_s2 }
  0xa7   : > { %p1419_p3 = pnand %p1417_p8, %p1403_p1  ;;  %p1425_p4 = scmp.lt.s32.totalorder %s1423_s7, %s1416_s12 }
  0xa9   : > { %p1420_p13 = pneg %p1419_p3  ;;  %p1426_p6 = por %p1425_p4, %p1424_p11 }
  0xab   : > { %p1427_p7 = pnand %p1426_p6, %p1420_p13 }
  0xad   : > { %1430 = shalt.err (!%p1427_p7)
}
  0xae   : > { %s1578_s6 = smov 32   ;;  %s1579_s11 = smov 2  }
  0xaf   : > { %1194 = dma.hbm_to_vmem [thread:$0]  (!%p1811_p2), %s1807_s3, 192, %s1815_s4, %s403_s5, %s1578_s6, %s1578_s6, %s1579_s11  }
  0xb0   : > { %s1116_s22 = smul.u32 6, %s1800_s27  ;;  %s2269_s1 = sld [smem:[#allocation32_spill]] }
  0xb1   : > { %s1117_s19 = smul.u32 96, %s1563_s17  ;;  %s425_s8 = scalar_lea.sflag [#allocation8], %s1800_s27 }
  0xb2   : > { %s428_s7 = scalar_lea.vmem [#allocation7], %s1116_s22 }
  0xb3   : > { %s436_s0 = sshll.u32 %s428_s7, 4  ;;  %s1855_s0 = int_to_ptr.vmem [resolvable:$true] %s436_s0 }
  0xb6   : > { %s1853_s2 = scalar_lea.hbm %s2269_s1, %s1117_s19  ;;  %s1436_s5 = scalar_lea.hbm %s2269_s1, 192 }
  0xb7   : > { %s1431_s9 = scalar_lea.hbm %s1853_s2, 96  ;;  %p1437_p9 = scmp.lt.u32.totalorder %s1853_s2, %s2269_s1 }
  0xb8   : > { %p1432_p11 = scmp.ne.s32.totalorder %s1853_s2, %s1431_s9  ;;  %p1438_p12 = scmp.lt.u32.totalorder %s1436_s5, %s1431_s9 }
  0xb9   : > { %p1440_p8 = scmp.lt.u32.totalorder %s1431_s9, %s1853_s2 }
  0xba   : > { %p1434_p13 = pnand %p1432_p11, %p1403_p1  ;;  %p1439_p0 = por %p1438_p12, %p1437_p9 }
  0xbc   : > { %p1435_p5 = pneg %p1434_p13  ;;  %p1441_p3 = por %p1440_p8, %p1439_p0 }
  0xbe   : > { %p1442_p4 = pnand %p1441_p3, %p1435_p5 }
  0xc0   : > { %1445 = shalt.err (!%p1442_p4)
}
  0xc1   : > { %s1446_s22 = scalar_lea.vmem %s1855_s0, 96  ;;  %s1580_s30 = smov [#allocation7]  }
  0xc2   : > { %p1447_p6 = scmp.ne.s32.totalorder %s1855_s0, %s1446_s22  ;;  %s1451_s7 = sshll.u32 %s1580_s30, 4  ;;  %s1452_s7 = int_to_ptr.vmem [resolvable:$false] %s1451_s7 }
  0xc3   : > { %s1453_s3 = scalar_lea.vmem %s1452_s7, 192  ;;  %p1454_p13 = scmp.lt.s32.totalorder %s1855_s0, %s1452_s7 }
  0xc4   : > { %p1449_p7 = pnand %p1447_p6, %p1403_p1  ;;  %p1455_p9 = scmp.lt.s32.totalorder %s1453_s3, %s1446_s22 }
  0xc6   : > { %p1450_p11 = pneg %p1449_p7  ;;  %p1456_p12 = por %p1455_p9, %p1454_p13 }
  0xc8   : > { %p1457_p0 = pnand %p1456_p12, %p1450_p11 }
  0xca   : > { %1460 = shalt.err (!%p1457_p0)
}
  0xcb   : > { %1197 = dma.hbm_to_vmem [thread:$0]  (!%p1811_p2), %s1853_s2, 96, %s1855_s0, %s425_s8, %s1578_s6, %s1578_s6, %s1579_s11  }
  0xcc   : > { %p2270_p1 = scmp.ne.s32.totalorder %s2250_s24, 0 }
  0xcd   : > { %s1889_s9 = sand.u32 (!%p2270_p1), 1, %s1551_s14  }
  0xce   : > { %448 = sbr.rel (%p2270_p1) target bundleno = 546 (0x222), region = 60  ;;  %s451_s5 = scalar_lea.sflag (!%p2270_p1), [#allocation4], %s1889_s9 }
  0xcf   : > { %s1118_s4 = smul.u32 (!%p2270_p1), 12, %s1889_s9 }
  0xd1   : > { %s1893_s26 = scalar_lea.vmem (!%p2270_p1), [#allocation3], %s1118_s4 }
  0xd5   : > { %1514 = dma.done.wait (%p1783_p10), %s451_s5, 192  }
  0xd6   : > { %1516 = vsyncadd (%p1783_p10), %s451_s5, 4294967104  ;;  %s1119_s0 = smul.u32 6, %s1889_s9  ;;  %s460_s8 = scalar_lea.sflag [#allocation8], %s1889_s9 }
  0xd8   : > { %s1901_s24 = scalar_lea.vmem [#allocation7], %s1119_s0 }
  0xd9   : > { %1518 = dma.done.wait (%p1783_p10), %s460_s8, 96  }
  0xda   : > { %1520 = vsyncadd (%p1783_p10), %s460_s8, 4294967200  ;;  %p2271_p2 = scmp.ne.s32.totalorder %s2249_s23, 0 }
  0xdc   : > { %1522 = dma.done.wait (%p2271_p2), [#allocation6], 16  }
  0xdd   : > { %1524 = vsyncadd (%p2271_p2), [#allocation6], 4294967280 }
  0xde   : > { %1526 = dma.done.wait (%p2271_p2), [#allocation11], 32  }
  0xdf   : > { %1528 = vsyncadd (%p2271_p2), [#allocation11], 4294967264 }
  0xe0   : > { %1530 = dma.done.wait (%p2271_p2), [#allocation14], 80  }
  0xe1   : > { %1532 = vsyncadd (%p2271_p2), [#allocation14], 4294967216 }
  0xe2   : > { %1534 = dma.done.wait (%p2271_p2), [#allocation17], 80  }
  0xe3   : > { %1536 = vsyncadd (%p2271_p2), [#allocation17], 4294967216 }
  0xe4   : > { %1538 = dma.done.wait (%p2271_p2), [#allocation20], 16  }
  0xe5   : > { %1540 = vsyncadd (%p2271_p2), [#allocation20], 4294967280 }
  0xe6   : > { %500 = sfence }
  0xe7   : > { %s538_s21 = sld [smem:[#allocation9 + %s1559_s16]]  ;;  %v1935_v0 = vld [vmem:[%s1893_s26 + $0x6] sm:$0x3]  ;;  %v1938_v1 = vld [vmem:[%s1893_s26 + $0x8] sm:$0x3]  ;;  %v1581_v2 = vmov 0.0  }
  0xe8   : > { %s539_s27 = sld [smem:[#allocation10 + %s1559_s16]]  ;;  %599 = vst [vmem:[#allocation2] sm:$0x3] %v1581_v2  ;;  %600 = vst [vmem:[#allocation2 + $0x2] sm:$0x3] %v1581_v2  ;;  %vm797_vm0 = vcmask 1041408  }
  0xe9   : > { %s1930_s6 = sld [smem:[#allocation12 + %s1559_s16]]  ;;  %601 = vst [vmem:[#allocation2 + $0x4] sm:$0x3] %v1581_v2  ;;  %v1948_v3 = vld [vmem:[%s1893_s26 + $0xa] sm:$0x3]  ;;  %p2272_p5 = scmp.ne.s32.totalorder %s2265_s25, 0 }
  0xea   : > { %s1932_s11 = sld [smem:[#allocation13]]  ;;  %s1940_s23 = sld [smem:[#allocation13 + $0x1]]  ;;  %v1959_v4 = vld [vmem:[%s1893_s26] sm:$0x3]  ;;  %v1966_v5 = vld [vmem:[%s1901_s24] sm:$0x3] }
  0xeb   : > { %s1942_s2 = sld [smem:[#allocation13 + $0x2]]  ;;  %s1950_s19 = sld [smem:[#allocation13 + $0x3]]  ;;  %v1971_v7 = vld [vmem:[%s1893_s26 + $0x2] sm:$0x3]  ;;  %v1974_v8 = vld [vmem:[%s1901_s24 + $0x2] sm:$0x3] }
  0xec   : > { %s1952_s12 = sld [smem:[#allocation13 + $0x4]]  ;;  %s1954_s22 = sld [smem:[#allocation13 + $0x5]]  ;;  %v1986_v13 = vld [vmem:[%s1901_s24 + $0x4] sm:$0x3]  ;;  %v1993_v14 = vld [vmem:[%s1893_s26 + $0x4] sm:$0x3] }
  0xed   : > { %s1956_s30 = sld [smem:[#allocation13 + $0x80]]  ;;  %s1961_s7 = sld [smem:[#allocation13 + $0x81]]  ;;  %v541_v6 = vstv %s538_s21 }
  0xee   : > { %s1963_s3 = sld [smem:[#allocation13 + $0x82]]  ;;  %s1968_s4 = sld [smem:[#allocation13 + $0x83]]  ;;  %v1976_v9 = vstv %s539_s27  ;;  %1279 = vrcp.f32 %v541_v6  ;;  %v629_v10 = vmul.f32 %v1935_v0, %v541_v6  ;;  %v633_v11 = vmul.f32 %v1938_v1, %v541_v6 }
  0xef   : > { %v636_v12 = vmul.f32 %v1948_v3, %v541_v6  ;;  %s1981_s5 = sld [smem:[#allocation13 + $0x84]]  ;;  %s1983_s0 = sld [smem:[#allocation13 + $0x100]]  ;;  %v631_v15 = vmul.f32 %v1976_v9, %v1966_v5  ;;  %v634_v16 = vmul.f32 %v1974_v8, %v1976_v9  ;;  %v637_v17 = vmul.f32 %v1986_v13, %v1976_v9 }
  0xf0   : > { %s1988_s8 = sld [smem:[#allocation13 + $0x85]]  ;;  %s1990_s21 = sld [smem:[#allocation13 + $0x101]]  ;;  %v639_v18 = vstv %s1932_s11  ;;  %v641_v20 = vstv %s1940_s23 }
  0xf1   : > { %s2002_s27 = sld [smem:[#allocation13 + $0x102]]  ;;  %s2004_s24 = sld [smem:[#allocation13 + $0x103]]  ;;  %v640_v19 = vmul.f32 %v639_v18, %v1959_v4  ;;  %v644_v21 = vstv %s1942_s2  ;;  %v647_v22 = vstv %s1950_s19  ;;  %v2014_v23 = vadd.f32 %v631_v15, %v629_v10 }
  0xf2   : > { %s2010_s26 = sld [smem:[#allocation13 + $0x104]]  ;;  %s2012_s1 = sld [smem:[#allocation13 + $0x105]]  ;;  %v2016_v24 = vadd.f32 %v634_v16, %v633_v11  ;;  %v642_v25 = vmul.f32 %v1971_v7, %v641_v20  ;;  %v2023_v26 = vadd.f32 %v637_v17, %v636_v12  ;;  %v645_v27 = vmul.f32 %v1993_v14, %v644_v21 }
  0xf3   : > { %s2019_s11 = sld [smem:[#allocation15]]  ;;  %v650_v28 = vstv %s1952_s12  ;;  %v668_v29 = vstv %s1956_s30  ;;  %s2028_s23 = sld [smem:[#allocation15 + $0x1]]  ;;  %v648_v31 = vmul.f32 %v647_v22, %v2014_v23  ;;  %v653_v32 = vstv %s1954_s22 }
  0xf4   : > { %s2021_s29 = sld [smem:[#allocation16]]  ;;  %s2030_s2 = sld [smem:[#allocation16 + $0x1]]  ;;  %v643_v30 = vadd.f32 %v642_v25, %v640_v19  ;;  %v669_v33 = vmul.f32 %v668_v29, %v1959_v4  ;;  %v670_v34 = vstv %s1961_s7  ;;  %v673_v35 = vstv %s1963_s3 }
  0xf5   : > { %s2034_s19 = sld [smem:[#allocation16 + $0x2]]  ;;  %v676_v36 = vstv %s1968_s4  ;;  %v651_v38 = vmul.f32 %v650_v28, %v2016_v24  ;;  %v671_v39 = vmul.f32 %v1971_v7, %v670_v34  ;;  %v674_v40 = vmul.f32 %v1993_v14, %v673_v35  ;;  %v602_v28 = vld [vmem:[#allocation2] sm:$0x3] }
  0xf6   : > { %s2040_s12 = sld [smem:[#allocation15 + $0x2]]  ;;  %v646_v37 = vadd.f32 %v645_v27, %v643_v30  ;;  %v654_v41 = vmul.f32 %v653_v32, %v2023_v26  ;;  %v679_v42 = vstv %s1981_s5  ;;  %v696_v43 = vstv %s1983_s0  ;;  %s1086_s5 = sld [smem:[#allocation18 + $0x3]] }
  0xf7   : > { %v698_v44 = vstv %s1990_s21  ;;  %v672_v46 = vadd.f32 %v671_v39, %v669_v33  ;;  %v677_v47 = vmul.f32 %v676_v36, %v2014_v23  ;;  %v682_v48 = vstv %s1988_s8  ;;  %s2080_s0 = sld [smem:[#allocation18 + $0x2]]  ;;  %s2082_s8 = sld [smem:[#allocation18 + $0x80]] }
  0xf8   : > { %v649_v45 = vadd.f32 %v648_v31, %v646_v37  ;;  %v1280_v49 = vpop.eup %1279  ;;  %v697_v50 = vmul.f32 %v696_v43, %v1959_v4  ;;  %v699_v51 = vmul.f32 %v1971_v7, %v698_v44  ;;  %v701_v52 = vstv %s2002_s27  ;;  %s2084_s21 = sld [smem:[#allocation18 + $0x81]]  ;;  %s2086_s27 = sld [smem:[#allocation18 + $0x82]] }
  0xf9   : > { %v704_v53 = vstv %s2004_s24  ;;  %1120 = vpush %v1280_v49  ;;  %v675_v55 = vadd.f32 %v674_v40, %v672_v46  ;;  %v680_v56 = vmul.f32 %v679_v42, %v2016_v24  ;;  %v702_v57 = vmul.f32 %v1993_v14, %v701_v52  ;;  %s2088_s24 = sld [smem:[#allocation18 + $0x100]] }
  0xfa   : > { %s564_s22 = smul.f32 %s2021_s29, %s1930_s6  ;;  %v652_v54 = vadd.f32 %v651_v38, %v649_v45  ;;  %v700_v58 = vadd.f32 %v699_v51, %v697_v50  ;;  %v705_v59 = vmul.f32 %v704_v53, %v2014_v23  ;;  %v707_v60 = vstv %s2010_s26  ;;  %s2090_s26 = sld [smem:[#allocation18 + $0x4]] }
  0xfb   : > { %s568_s30 = smul.f32 %s2030_s2, %s1930_s6  ;;  %v678_v62 = vadd.f32 %v677_v47, %v675_v55  ;;  %v683_v63 = vmul.f32 %v682_v48, %v2023_v26  ;;  %v710_v6 = vstv %s2012_s1  ;;  %v708_v12 = vmul.f32 %v707_v60, %v2016_v24  ;;  %s2076_s1 = sld [smem:[#allocation18]] }
  0xfc   : > { %s565_s7 = sadd.f32 %s564_s22, %s2019_s11  ;;  %s572_s3 = smul.f32 %s2034_s19, %s1930_s6  ;;  %v655_v61 = vadd.f32 %v654_v41, %v652_v54  ;;  %v703_v11 = vadd.f32 %v702_v57, %v700_v58  ;;  %v711_v19 = vmul.f32 %v710_v6, %v2023_v26  ;;  %v732_v40 = vstv %s1086_s5 }
  0xfd   : > { %s569_s29 = sadd.f32 %s2028_s23, %s568_s30  ;;  %v681_v15 = vadd.f32 %v680_v56, %v678_v62  ;;  %s2078_s6 = sld [smem:[#allocation18 + $0x1]]  ;;  %v729_v45 = vstv %s2080_s0  ;;  %v733_v46 = vmul.f32 %v732_v40, %v1959_v4  ;;  %v746_v47 = vstv %s2082_s8 }
  0xfe   : > { %v656_v10 = vstv %s565_s7  ;;  %s573_s4 = sadd.f32 %s2040_s12, %s572_s3  ;;  %v706_v18 = vadd.f32 %v705_v59, %v703_v11  ;;  %s2092_s11 = sld [smem:[#allocation18 + $0x101]]  ;;  %v748_v49 = vstv %s2084_s21  ;;  %v751_v50 = vstv %s2086_s27 }
  0xff   : > { %v657_v16 = vadd.f32 %v656_v10, %v655_v61  ;;  %v685_v17 = vstv %s569_s29  ;;  %v684_v20 = vadd.f32 %v683_v63, %v681_v15  ;;  %s2094_s23 = sld [smem:[#allocation18 + $0x83]]  ;;  %s2096_s2 = sld [smem:[#allocation18 + $0x102]]  ;;  %v768_v51 = vstv %s2088_s24 }
 0x100   : > { %v709_v21 = vadd.f32 %v708_v12, %v706_v18  ;;  %v713_v27 = vstv %s573_s4  ;;  %s2098_s19 = sld [smem:[#allocation18 + $0x103]]  ;;  %s2103_s12 = sld [smem:[#allocation18 + $0x5]]  ;;  %v735_v48 = vstv %s2090_s26 }
 0x101   : > { %v662_v22 = vsub.f32 %v1966_v5, %v657_v16  ;;  %v686_v25 = vadd.f32 %v685_v17, %v684_v20  ;;  %v658_v5 = vmul.f32 %v657_v16, %v1976_v9  ;;  %s2105_s22 = sld [smem:[#allocation18 + $0x84]]  ;;  %s2107_s30 = sld [smem:[#allocation18 + $0x85]]  ;;  %v724_v41 = vstv %s2076_s1 }
 0x102   : > { %v712_v29 = vadd.f32 %v711_v19, %v709_v21  ;;  %s2110_s7 = sld [smem:[#allocation18 + $0x104]]  ;;  %s2123_s29 = sld [smem:[#allocation18 + $0x105]]  ;;  %v736_v57 = vmul.f32 %v1971_v7, %v735_v48 }
 0x103   : > { %v663_v30 = vmul.f32 %v662_v22, %v662_v22  ;;  %v690_v31 = vsub.f32 %v1974_v8, %v686_v25  ;;  %v687_v8 = vmul.f32 %v686_v25, %v1976_v9  ;;  %v659_v42 = vsub.f32 %v2014_v23, %v658_v5  ;;  %s2135_s4 = sld [smem:[#allocation19]]  ;;  %s2140_s1 = sld [smem:[#allocation19 + $0x1]] }
 0x104   : > { %v714_v32 = vadd.f32 %v713_v27, %v712_v29  ;;  %v726_v44 = vstv %s2078_s6  ;;  %v770_v52 = vstv %s2092_s11  ;;  %s2142_s6 = sld [smem:[#allocation19 + $0x2]]  ;;  %v604_v27 = vld [vmem:[#allocation2 + $0x2] sm:$0x3]  ;;  %s1062_s5 = sshll.u32 %s1889_s9, 3 }
 0x105   : > { %v664_v33 = vadd.f32 %v663_v30, %v602_v28  ;;  %v691_v34 = vmul.f32 %v690_v31, %v690_v31  ;;  %v754_v23 = vstv %s2094_s23  ;;  %v773_v53 = vstv %s2096_s2  ;;  %s2160_s0 = scalar_lea.vmem [#allocation21], %s1062_s5  ;;  %s1111_s27 = sshll.u32 %s1559_s16, 7 }
 0x106   : > { %v718_v35 = vsub.f32 %v1986_v13, %v714_v32  ;;  %v715_v13 = vmul.f32 %v714_v32, %v1976_v9  ;;  %v688_v9 = vsub.f32 %v2016_v24, %v687_v8  ;;  %v738_v58 = vstv %s2103_s12  ;;  %796 = vst [vmem:[%s2160_s0] sm:$0xff] %v1581_v2  ;;  %s848_s24 = sshll.u32 %s2160_s0, 4  ;;  %s2171_s23 = scalar_lea.hbm %s2231_s10, %s1111_s27  ;;  %s2173_s24 = int_to_ptr.vmem [resolvable:$true] %s848_s24 }
 0x107   : > { %v692_v36 = vadd.f32 %v691_v34, %v664_v33  ;;  %v755_v59 = vmul.f32 %v754_v23, %v1959_v4  ;;  %v757_v60 = vstv %s2105_s22  ;;  %v760_v61 = vstv %s2107_s30  ;;  %s1461_s12 = scalar_lea.vmem %s2173_s24, 128  ;;  %s1582_s16 = smov [#allocation21]  }
 0x108   : > { %v719_v37 = vmul.f32 %v718_v35, %v718_v35  ;;  %v716_v43 = vsub.f32 %v2023_v26, %v715_v13  ;;  %v776_v26 = vstv %s2098_s19  ;;  %v779_v16 = vstv %s2110_s7  ;;  %s835_s19 = scalar_lea.sflag [#allocation5], %s1889_s9  ;;  %p1462_p10 = scmp.ne.s32.totalorder %s2173_s24, %s1461_s12 }
 0x109   : > { %v777_v10 = vmul.f32 %v776_v26, %v1959_v4  ;;  %v782_v31 = vstv %s2123_s29  ;;  %v758_v34 = vmul.f32 %v1971_v7, %v757_v60  ;;  %v780_v35 = vmul.f32 %v1971_v7, %v779_v16  ;;  %s1465_s22 = sshll.u32 %s1582_s16, 4  ;;  %s1466_s22 = int_to_ptr.vmem [resolvable:$false] %s1465_s22 }
 0x10a   : > { %v720_v38 = vadd.f32 %v719_v37, %v692_v36  ;;  %v761_v8 = vmul.f32 %v1993_v14, %v760_v61  ;;  %v783_v40 = vmul.f32 %v1993_v14, %v782_v31  ;;  %v785_v48 = vstv %s2142_s6  ;;  %p1463_p8 = pnand %p1462_p10, %p2272_p5  ;;  %s1467_s30 = scalar_lea.vmem %s1466_s22, 256 }
 0x10b   : > { %p1468_p4 = scmp.lt.s32.totalorder %s2173_s24, %s1466_s22  ;;  %p1469_p6 = scmp.lt.s32.totalorder %s1467_s30, %s1461_s12 }
 0x10c   : > { %v798_v39 = vsel %vm797_vm0, %v720_v38, 0.0  ;;  %790 = vst [vmem:[#allocation2] sm:$0x3] %v720_v38  ;;  %p1464_p3 = pneg %p1463_p8 }
 0x10d   : > { %799 = vadd.xlane.f32.xlu0 %v798_v39  ;;  %v739_v39 = vmul.f32 %v1993_v14, %v738_v58  ;;  %p1470_p7 = por %p1469_p6, %p1468_p4 }
 0x10f   : > { %p1471_p11 = pnand %p1470_p7, %p1464_p3 }
 0x12a   : > { %s1121_s3 = spop %1120 }
 0x12b   : > { %v660_v24 = vstv %s1121_s3 }
 0x12c   : > { %v661_v54 = vmul.f32 %v660_v24, %v659_v42  ;;  %v689_v55 = vmul.f32 %v688_v9, %v660_v24  ;;  %v717_v56 = vmul.f32 %v716_v43, %v660_v24  ;;  %v741_v43 = vstv %s2135_s4 }
 0x12e   : > { %v725_v62 = vmul.f32 %v724_v41, %v661_v54  ;;  %v727_v63 = vmul.f32 %v726_v44, %v689_v55  ;;  %v747_v6 = vmul.f32 %v746_v47, %v661_v54  ;;  %v749_v11 = vmul.f32 %v748_v49, %v689_v55 }
 0x12f   : > { %v769_v12 = vmul.f32 %v768_v51, %v661_v54  ;;  %v771_v15 = vmul.f32 %v770_v52, %v689_v55  ;;  %v730_v18 = vmul.f32 %v729_v45, %v717_v56  ;;  %v665_v19 = vsub.f32 %v661_v54, %v1935_v0 }
 0x130   : > { %v728_v17 = vadd.f32 %v727_v63, %v725_v62  ;;  %v693_v20 = vsub.f32 %v689_v55, %v1938_v1  ;;  %v750_v21 = vadd.f32 %v749_v11, %v747_v6  ;;  %v752_v22 = vmul.f32 %v751_v50, %v717_v56 }
 0x131   : > { %v772_v4 = vadd.f32 %v771_v15, %v769_v12  ;;  %v774_v25 = vmul.f32 %v773_v53, %v717_v56  ;;  %v666_v29 = vmul.f32 %v665_v19, %v665_v19  ;;  %v721_v30 = vsub.f32 %v717_v56, %v1948_v3  ;;  %v606_v53 = vld [vmem:[#allocation2 + $0x4] sm:$0x3] }
 0x132   : > { %v731_v28 = vadd.f32 %v730_v18, %v728_v17  ;;  %v753_v32 = vadd.f32 %v752_v22, %v750_v21  ;;  %v694_v38 = vmul.f32 %v693_v20, %v693_v20  ;;  %v763_v47 = vstv %s2140_s1 }
 0x133   : > { %v775_v33 = vadd.f32 %v774_v25, %v772_v4  ;;  %v667_v37 = vadd.f32 %v666_v29, %v604_v27  ;;  %v722_v42 = vmul.f32 %v721_v30, %v721_v30 }
 0x134   : > { %v734_v36 = vadd.f32 %v733_v46, %v731_v28  ;;  %v756_v5 = vadd.f32 %v755_v59, %v753_v32 }
 0x135   : > { %v778_v13 = vadd.f32 %v777_v10, %v775_v33  ;;  %v695_v41 = vadd.f32 %v694_v38, %v667_v37 }
 0x136   : > { %v737_v9 = vadd.f32 %v736_v57, %v734_v36  ;;  %v759_v44 = vadd.f32 %v758_v34, %v756_v5 }
 0x137   : > { %v781_v45 = vadd.f32 %v780_v35, %v778_v13  ;;  %v723_v7 = vadd.f32 %v722_v42, %v695_v41 }
 0x138   : > { %v740_v46 = vadd.f32 %v739_v39, %v737_v9  ;;  %v762_v49 = vadd.f32 %v761_v8, %v759_v44 }
 0x139   : > { %v784_v50 = vadd.f32 %v783_v40, %v781_v45  ;;  %v810_v51 = vsel %vm797_vm0, %v723_v7, 0.0  ;;  %791 = vst [vmem:[#allocation2 + $0x2] sm:$0x3] %v723_v7 }
 0x13a   : > { %v742_v23 = vadd.f32 %v741_v43, %v740_v46  ;;  %811 = vadd.xlane.f32.xlu0 %v810_v51  ;;  %v764_v24 = vadd.f32 %v763_v47, %v762_v49 }
 0x13b   : > { %v786_v14 = vadd.f32 %v785_v48, %v784_v50 }
 0x13c   : > { %v743_v52 = vsub.f32 %v742_v23, %v1935_v0  ;;  %v765_v26 = vsub.f32 %v764_v24, %v1938_v1 }
 0x13d   : > { %v787_v55 = vsub.f32 %v786_v14, %v1948_v3 }
 0x13e   : > { %v744_v54 = vand.u32 2147483647, %v743_v52  ;;  %v766_v57 = vand.u32 2147483647, %v765_v26 }
 0x13f   : > { %v788_v59 = vand.u32 2147483647, %v787_v55 }
 0x140   : > { %v745_v56 = vadd.f32 %v744_v54, %v606_v53 }
 0x142   : > { %v767_v58 = vadd.f32 %v766_v57, %v745_v56 }
 0x144   : > { %v789_v60 = vadd.f32 %v788_v59, %v767_v58 }
 0x146   : > { %v822_v61 = vsel %vm797_vm0, %v789_v60, 0.0  ;;  %792 = vst [vmem:[#allocation2 + $0x4] sm:$0x3] %v789_v60 }
 0x147   : > { %823 = vadd.xlane.f32.xlu1 %v822_v61 }
 0x19a   : > { %v800_v0 = vpop.xlane.xlu0 %799 }
 0x19b   : > { %v801_v1 = vrot.slane %v800_v0, 4 }
 0x19d   : > { %v802_v62 = vadd.f32 %v801_v1, %v800_v0 }
 0x19f   : > { %v803_v63 = vrot.slane %v802_v62, 2 }
 0x1a1   : > { %v804_v3 = vadd.f32 %v803_v63, %v802_v62 }
 0x1a3   : > { %v805_v6 = vrot.slane %v804_v3, 1 }
 0x1a5   : > { %v806_v10 = vadd.f32 %v805_v6, %v804_v3 }
 0x1a7   : > { %1122 = vpush %v806_v10 }
 0x1c7   : > { %v812_v11 = vpop.xlane.xlu0 %811 }
 0x1c8   : > { %v813_v12 = vrot.slane %v812_v11, 4 }
 0x1ca   : > { %v814_v15 = vadd.f32 %v813_v12, %v812_v11 }
 0x1cc   : > { %v815_v16 = vrot.slane %v814_v15, 2 }
 0x1ce   : > { %v816_v17 = vadd.f32 %v815_v16, %v814_v15 }
 0x1d0   : > { %v817_v18 = vrot.slane %v816_v17, 1 }
 0x1d2   : > { %v818_v19 = vadd.f32 %v817_v18, %v816_v17 }
 0x1d4   : > { %v824_v20 = vpop.xlane.xlu1 %823  ;;  %1124 = vpush %v818_v19 }
 0x1d5   : > { %v825_v2 = vrot.slane %v824_v20, 4 }
 0x1d7   : > { %v826_v21 = vadd.f32 %v825_v2, %v824_v20 }
 0x1d8   : > { %s1123_s8 = spop %1122 }
 0x1d9   : > { %v827_v22 = vrot.slane %v826_v21, 2  ;;  %v808_v4 = vstv %s1123_s8 }
 0x1da   : > { %809 = vst [vmem:[%s2160_s0] sm:$0x1] %v808_v4 }
 0x1db   : > { %v828_v25 = vadd.f32 %v827_v22, %v826_v21 }
 0x1dd   : > { %v829_v27 = vrot.slane %v828_v25, 1 }
 0x1df   : > { %v830_v28 = vadd.f32 %v829_v27, %v828_v25 }
 0x1e1   : > { %1126 = vpush %v830_v28 }
 0x205   : > { %s1125_s21 = spop %1124 }
 0x206   : > { %v820_v29 = vstv %s1125_s21 }
 0x207   : > { %821 = vst [vmem:[%s2160_s0 + $0x1] sm:$0x1] %v820_v29 }
 0x212   : > { %s1127_s2 = spop %1126 }
 0x213   : > { %v832_v30 = vstv %s1127_s2 }
 0x214   : > { %833 = vst [vmem:[%s2160_s0 + $0x2] sm:$0x1] %v832_v30 }
 0x215   : > { %1474 = shalt.err (!%p1471_p11)
}
 0x216   : > { %s1475_s9 = scalar_lea.hbm %s2171_s23, 128  ;;  %s1479_s29 = scalar_lea.hbm %s2231_s10, 256 }
 0x217   : > { %p1476_p13 = scmp.ne.s32.totalorder %s2171_s23, %s1475_s9  ;;  %p1480_p0 = scmp.lt.u32.totalorder %s2171_s23, %s2231_s10 }
 0x218   : > { %p1481_p1 = scmp.lt.u32.totalorder %s1479_s29, %s1475_s9  ;;  %p1483_p10 = scmp.lt.u32.totalorder %s1475_s9, %s2171_s23 }
 0x219   : > { %p1477_p9 = pnand %p1476_p13, %p2272_p5 }
 0x21a   : > { %p1482_p2 = por %p1481_p1, %p1480_p0 }
 0x21b   : > { %p1478_p12 = pneg %p1477_p9 }
 0x21c   : > { %p1484_p8 = por %p1483_p10, %p1482_p2 }
 0x21e   : > { %p1485_p3 = pnand %p1484_p8, %p1478_p12 }
 0x220   : > { %1488 = shalt.err (!%p1485_p3)
}
 0x221   : > { %1164 = dma.vmem_to_hbm [thread:$0]  (%p2272_p5), %s2173_s24, 128, %s2171_s23, %s835_s19  }
 0x222 PF: > { %s860_s6 = sand.u32 1, %s1547_s13   ;;  %p2273_p4 = scmp.ne.s32.totalorder %s2266_s28, 0 }
 0x223   : > { %p2274_p6 = scmp.ge.s32.totalorder %s1567_s18, 2  ;;  %s861_s5 = scalar_lea.sflag [#allocation5], %s860_s6 }
 0x225   : > { %p1199_p7 = pnand %p2274_p6, %p2273_p4 }
 0x227   : > { %1542 = dma.done.wait (!%p1199_p7), %s861_s5, 128  }
 0x228   : > { %1544 = vsyncadd (!%p1199_p7), %s861_s5, 4294967168  ;;  %s34_s18 = sadd.s32 1, %s1567_s18   ;;  %s2275_s25 = sld [smem:[#allocation30_spill]] }
 0x229   : > { %p31_p11 = scmp.ge.s32.totalorder %s34_s18, 4   ;;  %s2276_s13 = smov %s1551_s14 }
 0x22a   : > { %s2277_s14 = smov %s1555_s15  ;;  %s2278_s15 = smov %s1792_s20 }
 0x22b   : > { %s2279_s16 = smov %s1563_s17  ;;  %33 = sbr.rel (!%p31_p11) target bundleno = 24 (0x18), region = 168 }
 0x22e   : > { %s2280_s17 = smov %s2275_s25 }
 0x232   :  { %866 = vsyncpa [#allocation4], 1 }
 0x233   :  { %868 = vsyncpa [#allocation4 + $0x1], 1 }
 0x234   :  { %869 = vsyncpa [#allocation8], 1 }
 0x235   :  { %871 = vsyncpa [#allocation8 + $0x1], 1 }
 0x236   :  { %872 = vsyncpa [#allocation5], 1 }
 0x237   :  { %874 = vsyncpa [#allocation5 + $0x1], 1 }
 0x238   :  { %875 = vsyncpa [#allocation6], 1 }
 0x239   :  { %877 = vsyncpa [#allocation6 + $0x1], 1 }
 0x23a   :  { %878 = vsyncpa [#allocation11], 1 }
 0x23b   :  { %879 = vsyncpa [#allocation14], 1 }
 0x23c   :  { %880 = vsyncpa [#allocation17], 1 }
 0x23d   :  { %881 = vsyncpa [#allocation20], 1 }

</bundles_post_ra>
